<compile_context>
chip_gen: v6e
topology: v6e:2x2x1
jax: 0.10.0
libtpu: 0.0.40
codegen_flags: <defaults>
</compile_context>

<pallas_src>
import functools

import jax
import jax.numpy as jnp
from jax import lax
from jax.experimental import pallas as pl
from jax.experimental.pallas import tpu as pltpu


def _log_softmax(x):
    # numerically stable log-softmax along last axis (f32)
    m = jnp.max(x, axis=-1, keepdims=True)
    s = x - m
    return s - jnp.log(jnp.sum(jnp.exp(s), axis=-1, keepdims=True))


def _sigmoid(x):
    # sigmoid(x) = 0.5 * (1 + tanh(x/2)): one EUP tanh + one FMA, no divide.
    return 0.5 * jnp.tanh(0.5 * x) + 0.5


def _jazz_lstm_kernel(
    ids_ref,       # (B, T)        int32  SMEM   token ids
    emb_w_ih_ref,  # (V, 4H)       f32    VMEM   embedding @ W_ih (folded at init)
    b_ref,         # (1, 4H)       f32    VMEM   b_ih + b_hh
    w_hh_ref,      # (H, 4H)       bf16   VMEM
    w_heads_ref,   # (H, Nn+Nd)    bf16   VMEM   [W_note | W_dur]
    b_heads_ref,   # (1, Nn+Nd)    f32    VMEM
    out_ref,       # (T*BP, Nn+Nd) f32    VMEM   fused log-probs, row = t*BP + b
    *,
    seq_len, batch, batch_pad, hidden, note_size,
):
    T, B, BP, H, Nn = seq_len, batch, batch_pad, hidden, note_size
    V = emb_w_ih_ref.shape[0]

    # ---- In-kernel embedding "gather": build a (T*BP, 1) id column from SMEM
    # scalars, expand to a one-hot matrix, and select rows of (emb @ W_ih) on
    # the MXU.  onehot @ (emb @ W_ih) == emb[ids] @ W_ih exactly (0/1 weights),
    # so the input projection stays full f32.
    rows = lax.broadcasted_iota(jnp.int32, (T * BP, 1), 0)
    ids_col = jnp.zeros((T * BP, 1), jnp.int32)        # padded rows keep id 0
    for t in range(T):
        for b in range(B):
            ids_col = jnp.where(rows == t * BP + b, ids_ref[b, t], ids_col)
    onehot = (ids_col == lax.broadcasted_iota(jnp.int32, (T * BP, V), 1)
              ).astype(jnp.float32)                    # (T*BP, V)

    # Non-recurrent input projection for ALL steps + fused bias, one MXU call.
    xw = (
        jnp.dot(onehot, emb_w_ih_ref[...], preferred_element_type=jnp.float32)
        + b_ref[...]
    )  # (T*BP, 4H) f32

    w_hh = w_hh_ref[...]  # loop-invariant: hoisted once for the whole recurrence

    h = jnp.zeros((BP, H), jnp.float32)
    c = jnp.zeros((BP, H), jnp.float32)
    hs = []

    # Fully unrolled T-step recurrence; only h @ W_hh is on the serial chain.
    # PyTorch gate order: i, f, g, o.
    for t in range(T):
        gates = xw[t * BP:(t + 1) * BP, :] + jnp.dot(
            h.astype(jnp.bfloat16), w_hh, preferred_element_type=jnp.float32)
        i_g = _sigmoid(gates[:, 0 * H:1 * H])
        f_g = _sigmoid(gates[:, 1 * H:2 * H])
        g_g = jnp.tanh(gates[:, 2 * H:3 * H])
        o_g = _sigmoid(gates[:, 3 * H:4 * H])
        c = f_g * c + i_g * g_g
        h = o_g * jnp.tanh(c)
        hs.append(h)                       # register-resident, no VMEM scratch

    hid = jnp.concatenate(hs, axis=0).astype(jnp.bfloat16)   # (T*BP, H)

    # Both classifier heads fused into one matmul; per-head log-softmax in f32.
    logits = (
        jnp.dot(hid, w_heads_ref[...], preferred_element_type=jnp.float32)
        + b_heads_ref[...]
    )  # (T*BP, Nn+Nd)
    out_ref[...] = jnp.concatenate(
        [_log_softmax(logits[:, :Nn]), _log_softmax(logits[:, Nn:])], axis=1)


@functools.partial(jax.jit, static_argnames=("note_size",))
def jazz_melody_lstm_forward(x_ids, kparams, *, note_size):
    """x_ids: int32 (B, T).  Returns (note_out (B,T,Nn), dur_out (B,T,Nd))."""
    B, T = x_ids.shape
    BP = ((B + 7) // 8) * 8              # pad batch to the f32 sublane count
    H = kparams["w_hh"].shape[0]
    Ntot = kparams["w_heads"].shape[1]
    Nn = note_size

    kernel = functools.partial(
        _jazz_lstm_kernel, seq_len=T, batch=B, batch_pad=BP, hidden=H,
        note_size=Nn)

    out = pl.pallas_call(
        kernel,
        out_shape=jax.ShapeDtypeStruct((T * BP, Ntot), jnp.float32),
        in_specs=[
            pl.BlockSpec(memory_space=pltpu.MemorySpace.SMEM),   # token ids
            pl.BlockSpec(memory_space=pltpu.MemorySpace.VMEM),   # emb @ W_ih
            pl.BlockSpec(memory_space=pltpu.MemorySpace.VMEM),   # fused LSTM bias
            pl.BlockSpec(memory_space=pltpu.MemorySpace.VMEM),   # W_hh
            pl.BlockSpec(memory_space=pltpu.MemorySpace.VMEM),   # fused head weights
            pl.BlockSpec(memory_space=pltpu.MemorySpace.VMEM),   # fused head bias
        ],
        out_specs=pl.BlockSpec(memory_space=pltpu.MemorySpace.VMEM),
    )(
        x_ids,
        kparams["emb_w_ih"],
        kparams["b"],
        kparams["w_hh"],
        kparams["w_heads"],
        kparams["b_heads"],
    )

    # Tiny glue: drop batch padding, back to batch_first (B, T, .), split heads.
    out = out.reshape(T, BP, Ntot)[:, :B, :]
    out = jnp.transpose(out, (1, 0, 2))              # (B, T, Nn+Nd)
    return out[..., :Nn], out[..., Nn:]


def init_params(key, vocab_size, note_output_size, duration_output_size,
                embedding_dim=32, hidden_dim=128):
    """PyTorch-equivalent f32 parameters (W_ih/W_hh kept pre-transposed)."""
    ks = jax.random.split(key, 9)
    s = 0.1
    H = hidden_dim
    return {
        "embedding": s * jax.random.normal(ks[0], (vocab_size, embedding_dim), jnp.float32),
        # PyTorch stores weight_ih as (4H, E); we keep the transposed (E, 4H).
        "w_ih": s * jax.random.normal(ks[1], (embedding_dim, 4 * H), jnp.float32),
        "w_hh": s * jax.random.normal(ks[2], (H, 4 * H), jnp.float32),
        # b = b_ih + b_hh, gate order i, f, g, o.
        "b": (s * jax.random.normal(ks[3], (1, 4 * H), jnp.float32)
              + s * jax.random.normal(ks[4], (1, 4 * H), jnp.float32)),
        "w_note": s * jax.random.normal(ks[5], (H, note_output_size), jnp.float32),
        "b_note": s * jax.random.normal(ks[6], (1, note_output_size), jnp.float32),
        "w_dur": s * jax.random.normal(ks[7], (H, duration_output_size), jnp.float32),
        "b_dur": s * jax.random.normal(ks[8], (1, duration_output_size), jnp.float32),
    }


def prepare_kernel_params(raw):
    """One-time, init-time weight prep so the jitted forward is kernel-only."""
    return {
        "emb_w_ih": jnp.dot(raw["embedding"], raw["w_ih"]),             # (V, 4H) f32
        "b": raw["b"],                                                  # (1, 4H) f32
        "w_hh": raw["w_hh"].astype(jnp.bfloat16),                       # (H, 4H) bf16
        "w_heads": jnp.concatenate([raw["w_note"], raw["w_dur"]],
                                   axis=1).astype(jnp.bfloat16),        # (H, Nn+Nd) bf16
        "b_heads": jnp.concatenate([raw["b_note"], raw["b_dur"]], axis=1),
    }


def reference_forward(x_ids, raw):
    """Pure-JAX f32 reference matching the PyTorch module's forward."""
    H = raw["w_hh"].shape[0]
    x = raw["embedding"][x_ids]                      # (B, T, E)
    B, T, _ = x.shape
    h = jnp.zeros((B, H), jnp.float32)
    c = jnp.zeros((B, H), jnp.float32)
    hs = []
    for t in range(T):
        g = x[:, t, :] @ raw["w_ih"] + h @ raw["w_hh"] + raw["b"]
        i = jax.nn.sigmoid(g[:, :H])
        f = jax.nn.sigmoid(g[:, H:2 * H])
        gg = jnp.tanh(g[:, 2 * H:3 * H])
        o = jax.nn.sigmoid(g[:, 3 * H:])
        c = f * c + i * gg
        h = o * jnp.tanh(c)
        hs.append(h)
    hseq = jnp.stack(hs, axis=1)                     # (B, T, H)
    note = jax.nn.log_softmax(hseq @ raw["w_note"] + raw["b_note"], axis=-1)
    dur = jax.nn.log_softmax(hseq @ raw["w_dur"] + raw["b_dur"], axis=-1)
    return note, dur


if __name__ == "__main__":
    # Small shapes implied by the module: token ids (B, T), embedding_dim=32,
    # hidden_dim=128, small vocab / output sizes.
    vocab_size = 16
    note_output_size = 16
    duration_output_size = 8
    B, T = 2, 8

    key = jax.random.PRNGKey(0)
    k_param, k_x = jax.random.split(key)
    raw = init_params(k_param, vocab_size, note_output_size, duration_output_size)
    kparams = jax.block_until_ready(prepare_kernel_params(raw))   # one-time prep
    x_ids = jax.random.randint(k_x, (B, T), 0, vocab_size, dtype=jnp.int32)

    note_out, dur_out = jazz_melody_lstm_forward(
        x_ids, kparams, note_size=note_output_size)
    jax.block_until_ready((note_out, dur_out))

    assert note_out.shape == (B, T, note_output_size)
    assert dur_out.shape == (B, T, duration_output_size)
    # LogSoftmax sanity: exp(log-probs) sums to ~1 along the last axis.
    assert jnp.allclose(jnp.exp(note_out).sum(-1), 1.0, atol=1e-3)
    assert jnp.allclose(jnp.exp(dur_out).sum(-1), 1.0, atol=1e-3)
    # Match the pure-f32 JAX reference (bf16 recurrent/head matmuls -> loose tol).
    note_ref, dur_ref = reference_forward(x_ids, raw)
    assert jnp.allclose(note_out, note_ref, atol=5e-2), float(jnp.max(jnp.abs(note_out - note_ref)))
    assert jnp.allclose(dur_out, dur_ref, atol=5e-2), float(jnp.max(jnp.abs(dur_out - dur_ref)))

    print("KERNEL_OK")
</pallas_src>

<mosaic_0001>
module attributes {stable_mosaic.version = 11 : i64} {
  func.func @_jazz_lstm_kernel(%arg0: memref<2x8xi32, #tpu.memory_space<smem>>, %arg1: memref<16x512xf32, #tpu.memory_space<vmem>>, %arg2: memref<1x512xf32, #tpu.memory_space<vmem>>, %arg3: memref<128x512xbf16, #tpu.memory_space<vmem>>, %arg4: memref<128x24xbf16, #tpu.memory_space<vmem>>, %arg5: memref<1x24xf32, #tpu.memory_space<vmem>>, %arg6: memref<64x24xf32, #tpu.memory_space<vmem>>) attributes {dimension_semantics = [], scalar_prefetch = 0 : i64, scratch_operands = 0 : i64, tpu.core_type = #tpu.core_type<tc>} {
    %0 = tpu.iota {dimensions = array<i32: 0>} : vector<64x1xi32>
    %c0_i32 = arith.constant 0 : i32
    %1 = vector.broadcast %c0_i32 : i32 to vector<64x1xi32>
    %c0_i32_0 = arith.constant 0 : i32
    %2 = vector.broadcast %c0_i32_0 : i32 to vector<64x1xi32>
    %3 = arith.cmpi eq, %0, %2 : vector<64x1xi32>
    %c0 = arith.constant 0 : index
    %c0_1 = arith.constant 0 : index
    %4 = memref.load %arg0[%c0, %c0_1] : memref<2x8xi32, #tpu.memory_space<smem>>
    %5 = vector.broadcast %4 : i32 to vector<64x1xi32>
    %6 = arith.select %3, %5, %1 : vector<64x1xi1>, vector<64x1xi32>
    %c1_i32 = arith.constant 1 : i32
    %7 = vector.broadcast %c1_i32 : i32 to vector<64x1xi32>
    %8 = arith.cmpi eq, %0, %7 : vector<64x1xi32>
    %c1 = arith.constant 1 : index
    %c0_2 = arith.constant 0 : index
    %9 = memref.load %arg0[%c1, %c0_2] : memref<2x8xi32, #tpu.memory_space<smem>>
    %10 = vector.broadcast %9 : i32 to vector<64x1xi32>
    %11 = arith.select %8, %10, %6 : vector<64x1xi1>, vector<64x1xi32>
    %c8_i32 = arith.constant 8 : i32
    %12 = vector.broadcast %c8_i32 : i32 to vector<64x1xi32>
    %13 = arith.cmpi eq, %0, %12 : vector<64x1xi32>
    %c0_3 = arith.constant 0 : index
    %c1_4 = arith.constant 1 : index
    %14 = memref.load %arg0[%c0_3, %c1_4] : memref<2x8xi32, #tpu.memory_space<smem>>
    %15 = vector.broadcast %14 : i32 to vector<64x1xi32>
    %16 = arith.select %13, %15, %11 : vector<64x1xi1>, vector<64x1xi32>
    %c9_i32 = arith.constant 9 : i32
    %17 = vector.broadcast %c9_i32 : i32 to vector<64x1xi32>
    %18 = arith.cmpi eq, %0, %17 : vector<64x1xi32>
    %c1_5 = arith.constant 1 : index
    %c1_6 = arith.constant 1 : index
    %19 = memref.load %arg0[%c1_5, %c1_6] : memref<2x8xi32, #tpu.memory_space<smem>>
    %20 = vector.broadcast %19 : i32 to vector<64x1xi32>
    %21 = arith.select %18, %20, %16 : vector<64x1xi1>, vector<64x1xi32>
    %c16_i32 = arith.constant 16 : i32
    %22 = vector.broadcast %c16_i32 : i32 to vector<64x1xi32>
    %23 = arith.cmpi eq, %0, %22 : vector<64x1xi32>
    %c0_7 = arith.constant 0 : index
    %c2 = arith.constant 2 : index
    %24 = memref.load %arg0[%c0_7, %c2] : memref<2x8xi32, #tpu.memory_space<smem>>
    %25 = vector.broadcast %24 : i32 to vector<64x1xi32>
    %26 = arith.select %23, %25, %21 : vector<64x1xi1>, vector<64x1xi32>
    %c17_i32 = arith.constant 17 : i32
    %27 = vector.broadcast %c17_i32 : i32 to vector<64x1xi32>
    %28 = arith.cmpi eq, %0, %27 : vector<64x1xi32>
    %c1_8 = arith.constant 1 : index
    %c2_9 = arith.constant 2 : index
    %29 = memref.load %arg0[%c1_8, %c2_9] : memref<2x8xi32, #tpu.memory_space<smem>>
    %30 = vector.broadcast %29 : i32 to vector<64x1xi32>
    %31 = arith.select %28, %30, %26 : vector<64x1xi1>, vector<64x1xi32>
    %c24_i32 = arith.constant 24 : i32
    %32 = vector.broadcast %c24_i32 : i32 to vector<64x1xi32>
    %33 = arith.cmpi eq, %0, %32 : vector<64x1xi32>
    %c0_10 = arith.constant 0 : index
    %c3 = arith.constant 3 : index
    %34 = memref.load %arg0[%c0_10, %c3] : memref<2x8xi32, #tpu.memory_space<smem>>
    %35 = vector.broadcast %34 : i32 to vector<64x1xi32>
    %36 = arith.select %33, %35, %31 : vector<64x1xi1>, vector<64x1xi32>
    %c25_i32 = arith.constant 25 : i32
    %37 = vector.broadcast %c25_i32 : i32 to vector<64x1xi32>
    %38 = arith.cmpi eq, %0, %37 : vector<64x1xi32>
    %c1_11 = arith.constant 1 : index
    %c3_12 = arith.constant 3 : index
    %39 = memref.load %arg0[%c1_11, %c3_12] : memref<2x8xi32, #tpu.memory_space<smem>>
    %40 = vector.broadcast %39 : i32 to vector<64x1xi32>
    %41 = arith.select %38, %40, %36 : vector<64x1xi1>, vector<64x1xi32>
    %c32_i32 = arith.constant 32 : i32
    %42 = vector.broadcast %c32_i32 : i32 to vector<64x1xi32>
    %43 = arith.cmpi eq, %0, %42 : vector<64x1xi32>
    %c0_13 = arith.constant 0 : index
    %c4 = arith.constant 4 : index
    %44 = memref.load %arg0[%c0_13, %c4] : memref<2x8xi32, #tpu.memory_space<smem>>
    %45 = vector.broadcast %44 : i32 to vector<64x1xi32>
    %46 = arith.select %43, %45, %41 : vector<64x1xi1>, vector<64x1xi32>
    %c33_i32 = arith.constant 33 : i32
    %47 = vector.broadcast %c33_i32 : i32 to vector<64x1xi32>
    %48 = arith.cmpi eq, %0, %47 : vector<64x1xi32>
    %c1_14 = arith.constant 1 : index
    %c4_15 = arith.constant 4 : index
    %49 = memref.load %arg0[%c1_14, %c4_15] : memref<2x8xi32, #tpu.memory_space<smem>>
    %50 = vector.broadcast %49 : i32 to vector<64x1xi32>
    %51 = arith.select %48, %50, %46 : vector<64x1xi1>, vector<64x1xi32>
    %c40_i32 = arith.constant 40 : i32
    %52 = vector.broadcast %c40_i32 : i32 to vector<64x1xi32>
    %53 = arith.cmpi eq, %0, %52 : vector<64x1xi32>
    %c0_16 = arith.constant 0 : index
    %c5 = arith.constant 5 : index
    %54 = memref.load %arg0[%c0_16, %c5] : memref<2x8xi32, #tpu.memory_space<smem>>
    %55 = vector.broadcast %54 : i32 to vector<64x1xi32>
    %56 = arith.select %53, %55, %51 : vector<64x1xi1>, vector<64x1xi32>
    %c41_i32 = arith.constant 41 : i32
    %57 = vector.broadcast %c41_i32 : i32 to vector<64x1xi32>
    %58 = arith.cmpi eq, %0, %57 : vector<64x1xi32>
    %c1_17 = arith.constant 1 : index
    %c5_18 = arith.constant 5 : index
    %59 = memref.load %arg0[%c1_17, %c5_18] : memref<2x8xi32, #tpu.memory_space<smem>>
    %60 = vector.broadcast %59 : i32 to vector<64x1xi32>
    %61 = arith.select %58, %60, %56 : vector<64x1xi1>, vector<64x1xi32>
    %c48_i32 = arith.constant 48 : i32
    %62 = vector.broadcast %c48_i32 : i32 to vector<64x1xi32>
    %63 = arith.cmpi eq, %0, %62 : vector<64x1xi32>
    %c0_19 = arith.constant 0 : index
    %c6 = arith.constant 6 : index
    %64 = memref.load %arg0[%c0_19, %c6] : memref<2x8xi32, #tpu.memory_space<smem>>
    %65 = vector.broadcast %64 : i32 to vector<64x1xi32>
    %66 = arith.select %63, %65, %61 : vector<64x1xi1>, vector<64x1xi32>
    %c49_i32 = arith.constant 49 : i32
    %67 = vector.broadcast %c49_i32 : i32 to vector<64x1xi32>
    %68 = arith.cmpi eq, %0, %67 : vector<64x1xi32>
    %c1_20 = arith.constant 1 : index
    %c6_21 = arith.constant 6 : index
    %69 = memref.load %arg0[%c1_20, %c6_21] : memref<2x8xi32, #tpu.memory_space<smem>>
    %70 = vector.broadcast %69 : i32 to vector<64x1xi32>
    %71 = arith.select %68, %70, %66 : vector<64x1xi1>, vector<64x1xi32>
    %c56_i32 = arith.constant 56 : i32
    %72 = vector.broadcast %c56_i32 : i32 to vector<64x1xi32>
    %73 = arith.cmpi eq, %0, %72 : vector<64x1xi32>
    %c0_22 = arith.constant 0 : index
    %c7 = arith.constant 7 : index
    %74 = memref.load %arg0[%c0_22, %c7] : memref<2x8xi32, #tpu.memory_space<smem>>
    %75 = vector.broadcast %74 : i32 to vector<64x1xi32>
    %76 = arith.select %73, %75, %71 : vector<64x1xi1>, vector<64x1xi32>
    %c57_i32 = arith.constant 57 : i32
    %77 = vector.broadcast %c57_i32 : i32 to vector<64x1xi32>
    %78 = arith.cmpi eq, %0, %77 : vector<64x1xi32>
    %c1_23 = arith.constant 1 : index
    %c7_24 = arith.constant 7 : index
    %79 = memref.load %arg0[%c1_23, %c7_24] : memref<2x8xi32, #tpu.memory_space<smem>>
    %80 = vector.broadcast %79 : i32 to vector<64x1xi32>
    %81 = arith.select %78, %80, %76 : vector<64x1xi1>, vector<64x1xi32>
    %82 = tpu.iota {dimensions = array<i32: 1>} : vector<64x16xi32>
    %83 = vector.broadcast %81 : vector<64x1xi32> to vector<64x16xi32>
    %84 = arith.cmpi eq, %83, %82 : vector<64x16xi32>
    %85 = arith.extui %84 : vector<64x16xi1> to vector<64x16xi32>
    %86 = arith.sitofp %85 : vector<64x16xi32> to vector<64x16xf32>
    %c0_25 = arith.constant 0 : index
    %c0_26 = arith.constant 0 : index
    %87 = vector.load %arg1[%c0_25, %c0_26] : memref<16x512xf32, #tpu.memory_space<vmem>>, vector<16x512xf32>
    %cst = arith.constant dense<0.000000e+00> : vector<64x512xf32>
    %88 = tpu.matmul %86, %87, %cst {dimension_numbers = #tpu.dot_dimension_numbers<[1], [0], [0], [1], [0, 0, 1, 1], [], []>} : vector<64x16xf32>, vector<16x512xf32>, vector<64x512xf32> -> vector<64x512xf32>
    %c0_27 = arith.constant 0 : index
    %c0_28 = arith.constant 0 : index
    %89 = vector.load %arg2[%c0_27, %c0_28] : memref<1x512xf32, #tpu.memory_space<vmem>>, vector<1x512xf32>
    %90 = vector.broadcast %89 : vector<1x512xf32> to vector<64x512xf32>
    %91 = arith.addf %88, %90 : vector<64x512xf32>
    %c0_29 = arith.constant 0 : index
    %c0_30 = arith.constant 0 : index
    %92 = vector.load %arg3[%c0_29, %c0_30] : memref<128x512xbf16, #tpu.memory_space<vmem>>, vector<128x512xbf16>
    %cst_31 = arith.constant 0.000000e+00 : f32
    %93 = vector.broadcast %cst_31 : f32 to vector<8x128xf32>
    %cst_32 = arith.constant 0.000000e+00 : f32
    %94 = vector.broadcast %cst_32 : f32 to vector<8x128xf32>
    %95 = vector.extract_strided_slice %91 {offsets = [0, 0], sizes = [8, 512], strides = [1, 1]} : vector<64x512xf32> to vector<8x512xf32>
    %96 = arith.truncf %93 : vector<8x128xf32> to vector<8x128xbf16>
    %cst_33 = arith.constant dense<0.000000e+00> : vector<8x512xf32>
    %97 = tpu.matmul %96, %92, %cst_33 {dimension_numbers = #tpu.dot_dimension_numbers<[1], [0], [0], [1], [0, 0, 1, 1], [], []>} : vector<8x128xbf16>, vector<128x512xbf16>, vector<8x512xf32> -> vector<8x512xf32>
    %98 = arith.addf %95, %97 : vector<8x512xf32>
    %99 = vector.extract_strided_slice %98 {offsets = [0, 0], sizes = [8, 128], strides = [1, 1]} : vector<8x512xf32> to vector<8x128xf32>
    %cst_34 = arith.constant 5.000000e-01 : f32
    %100 = vector.broadcast %cst_34 : f32 to vector<8x128xf32>
    %101 = arith.mulf %100, %99 : vector<8x128xf32>
    %102 = math.tanh %101 : vector<8x128xf32>
    %cst_35 = arith.constant 5.000000e-01 : f32
    %103 = vector.broadcast %cst_35 : f32 to vector<8x128xf32>
    %104 = arith.mulf %103, %102 : vector<8x128xf32>
    %cst_36 = arith.constant 5.000000e-01 : f32
    %105 = vector.broadcast %cst_36 : f32 to vector<8x128xf32>
    %106 = arith.addf %104, %105 : vector<8x128xf32>
    %107 = vector.extract_strided_slice %98 {offsets = [0, 128], sizes = [8, 128], strides = [1, 1]} : vector<8x512xf32> to vector<8x128xf32>
    %cst_37 = arith.constant 5.000000e-01 : f32
    %108 = vector.broadcast %cst_37 : f32 to vector<8x128xf32>
    %109 = arith.mulf %108, %107 : vector<8x128xf32>
    %110 = math.tanh %109 : vector<8x128xf32>
    %cst_38 = arith.constant 5.000000e-01 : f32
    %111 = vector.broadcast %cst_38 : f32 to vector<8x128xf32>
    %112 = arith.mulf %111, %110 : vector<8x128xf32>
    %cst_39 = arith.constant 5.000000e-01 : f32
    %113 = vector.broadcast %cst_39 : f32 to vector<8x128xf32>
    %114 = arith.addf %112, %113 : vector<8x128xf32>
    %115 = vector.extract_strided_slice %98 {offsets = [0, 256], sizes = [8, 128], strides = [1, 1]} : vector<8x512xf32> to vector<8x128xf32>
    %116 = math.tanh %115 : vector<8x128xf32>
    %117 = vector.extract_strided_slice %98 {offsets = [0, 384], sizes = [8, 128], strides = [1, 1]} : vector<8x512xf32> to vector<8x128xf32>
    %cst_40 = arith.constant 5.000000e-01 : f32
    %118 = vector.broadcast %cst_40 : f32 to vector<8x128xf32>
    %119 = arith.mulf %118, %117 : vector<8x128xf32>
    %120 = math.tanh %119 : vector<8x128xf32>
    %cst_41 = arith.constant 5.000000e-01 : f32
    %121 = vector.broadcast %cst_41 : f32 to vector<8x128xf32>
    %122 = arith.mulf %121, %120 : vector<8x128xf32>
    %cst_42 = arith.constant 5.000000e-01 : f32
    %123 = vector.broadcast %cst_42 : f32 to vector<8x128xf32>
    %124 = arith.addf %122, %123 : vector<8x128xf32>
    %125 = arith.mulf %114, %94 : vector<8x128xf32>
    %126 = arith.mulf %106, %116 : vector<8x128xf32>
    %127 = arith.addf %125, %126 : vector<8x128xf32>
    %128 = math.tanh %127 : vector<8x128xf32>
    %129 = arith.mulf %124, %128 : vector<8x128xf32>
    %130 = vector.extract_strided_slice %91 {offsets = [8, 0], sizes = [8, 512], strides = [1, 1]} : vector<64x512xf32> to vector<8x512xf32>
    %131 = arith.truncf %129 : vector<8x128xf32> to vector<8x128xbf16>
    %cst_43 = arith.constant dense<0.000000e+00> : vector<8x512xf32>
    %132 = tpu.matmul %131, %92, %cst_43 {dimension_numbers = #tpu.dot_dimension_numbers<[1], [0], [0], [1], [0, 0, 1, 1], [], []>} : vector<8x128xbf16>, vector<128x512xbf16>, vector<8x512xf32> -> vector<8x512xf32>
    %133 = arith.addf %130, %132 : vector<8x512xf32>
    %134 = vector.extract_strided_slice %133 {offsets = [0, 0], sizes = [8, 128], strides = [1, 1]} : vector<8x512xf32> to vector<8x128xf32>
    %cst_44 = arith.constant 5.000000e-01 : f32
    %135 = vector.broadcast %cst_44 : f32 to vector<8x128xf32>
    %136 = arith.mulf %135, %134 : vector<8x128xf32>
    %137 = math.tanh %136 : vector<8x128xf32>
    %cst_45 = arith.constant 5.000000e-01 : f32
    %138 = vector.broadcast %cst_45 : f32 to vector<8x128xf32>
    %139 = arith.mulf %138, %137 : vector<8x128xf32>
    %cst_46 = arith.constant 5.000000e-01 : f32
    %140 = vector.broadcast %cst_46 : f32 to vector<8x128xf32>
    %141 = arith.addf %139, %140 : vector<8x128xf32>
    %142 = vector.extract_strided_slice %133 {offsets = [0, 128], sizes = [8, 128], strides = [1, 1]} : vector<8x512xf32> to vector<8x128xf32>
    %cst_47 = arith.constant 5.000000e-01 : f32
    %143 = vector.broadcast %cst_47 : f32 to vector<8x128xf32>
    %144 = arith.mulf %143, %142 : vector<8x128xf32>
    %145 = math.tanh %144 : vector<8x128xf32>
    %cst_48 = arith.constant 5.000000e-01 : f32
    %146 = vector.broadcast %cst_48 : f32 to vector<8x128xf32>
    %147 = arith.mulf %146, %145 : vector<8x128xf32>
    %cst_49 = arith.constant 5.000000e-01 : f32
    %148 = vector.broadcast %cst_49 : f32 to vector<8x128xf32>
    %149 = arith.addf %147, %148 : vector<8x128xf32>
    %150 = vector.extract_strided_slice %133 {offsets = [0, 256], sizes = [8, 128], strides = [1, 1]} : vector<8x512xf32> to vector<8x128xf32>
    %151 = math.tanh %150 : vector<8x128xf32>
    %152 = vector.extract_strided_slice %133 {offsets = [0, 384], sizes = [8, 128], strides = [1, 1]} : vector<8x512xf32> to vector<8x128xf32>
    %cst_50 = arith.constant 5.000000e-01 : f32
    %153 = vector.broadcast %cst_50 : f32 to vector<8x128xf32>
    %154 = arith.mulf %153, %152 : vector<8x128xf32>
    %155 = math.tanh %154 : vector<8x128xf32>
    %cst_51 = arith.constant 5.000000e-01 : f32
    %156 = vector.broadcast %cst_51 : f32 to vector<8x128xf32>
    %157 = arith.mulf %156, %155 : vector<8x128xf32>
    %cst_52 = arith.constant 5.000000e-01 : f32
    %158 = vector.broadcast %cst_52 : f32 to vector<8x128xf32>
    %159 = arith.addf %157, %158 : vector<8x128xf32>
    %160 = arith.mulf %149, %127 : vector<8x128xf32>
    %161 = arith.mulf %141, %151 : vector<8x128xf32>
    %162 = arith.addf %160, %161 : vector<8x128xf32>
    %163 = math.tanh %162 : vector<8x128xf32>
    %164 = arith.mulf %159, %163 : vector<8x128xf32>
    %165 = vector.extract_strided_slice %91 {offsets = [16, 0], sizes = [8, 512], strides = [1, 1]} : vector<64x512xf32> to vector<8x512xf32>
    %166 = arith.truncf %164 : vector<8x128xf32> to vector<8x128xbf16>
    %cst_53 = arith.constant dense<0.000000e+00> : vector<8x512xf32>
    %167 = tpu.matmul %166, %92, %cst_53 {dimension_numbers = #tpu.dot_dimension_numbers<[1], [0], [0], [1], [0, 0, 1, 1], [], []>} : vector<8x128xbf16>, vector<128x512xbf16>, vector<8x512xf32> -> vector<8x512xf32>
    %168 = arith.addf %165, %167 : vector<8x512xf32>
    %169 = vector.extract_strided_slice %168 {offsets = [0, 0], sizes = [8, 128], strides = [1, 1]} : vector<8x512xf32> to vector<8x128xf32>
    %cst_54 = arith.constant 5.000000e-01 : f32
    %170 = vector.broadcast %cst_54 : f32 to vector<8x128xf32>
    %171 = arith.mulf %170, %169 : vector<8x128xf32>
    %172 = math.tanh %171 : vector<8x128xf32>
    %cst_55 = arith.constant 5.000000e-01 : f32
    %173 = vector.broadcast %cst_55 : f32 to vector<8x128xf32>
    %174 = arith.mulf %173, %172 : vector<8x128xf32>
    %cst_56 = arith.constant 5.000000e-01 : f32
    %175 = vector.broadcast %cst_56 : f32 to vector<8x128xf32>
    %176 = arith.addf %174, %175 : vector<8x128xf32>
    %177 = vector.extract_strided_slice %168 {offsets = [0, 128], sizes = [8, 128], strides = [1, 1]} : vector<8x512xf32> to vector<8x128xf32>
    %cst_57 = arith.constant 5.000000e-01 : f32
    %178 = vector.broadcast %cst_57 : f32 to vector<8x128xf32>
    %179 = arith.mulf %178, %177 : vector<8x128xf32>
    %180 = math.tanh %179 : vector<8x128xf32>
    %cst_58 = arith.constant 5.000000e-01 : f32
    %181 = vector.broadcast %cst_58 : f32 to vector<8x128xf32>
    %182 = arith.mulf %181, %180 : vector<8x128xf32>
    %cst_59 = arith.constant 5.000000e-01 : f32
    %183 = vector.broadcast %cst_59 : f32 to vector<8x128xf32>
    %184 = arith.addf %182, %183 : vector<8x128xf32>
    %185 = vector.extract_strided_slice %168 {offsets = [0, 256], sizes = [8, 128], strides = [1, 1]} : vector<8x512xf32> to vector<8x128xf32>
    %186 = math.tanh %185 : vector<8x128xf32>
    %187 = vector.extract_strided_slice %168 {offsets = [0, 384], sizes = [8, 128], strides = [1, 1]} : vector<8x512xf32> to vector<8x128xf32>
    %cst_60 = arith.constant 5.000000e-01 : f32
    %188 = vector.broadcast %cst_60 : f32 to vector<8x128xf32>
    %189 = arith.mulf %188, %187 : vector<8x128xf32>
    %190 = math.tanh %189 : vector<8x128xf32>
    %cst_61 = arith.constant 5.000000e-01 : f32
    %191 = vector.broadcast %cst_61 : f32 to vector<8x128xf32>
    %192 = arith.mulf %191, %190 : vector<8x128xf32>
    %cst_62 = arith.constant 5.000000e-01 : f32
    %193 = vector.broadcast %cst_62 : f32 to vector<8x128xf32>
    %194 = arith.addf %192, %193 : vector<8x128xf32>
    %195 = arith.mulf %184, %162 : vector<8x128xf32>
    %196 = arith.mulf %176, %186 : vector<8x128xf32>
    %197 = arith.addf %195, %196 : vector<8x128xf32>
    %198 = math.tanh %197 : vector<8x128xf32>
    %199 = arith.mulf %194, %198 : vector<8x128xf32>
    %200 = vector.extract_strided_slice %91 {offsets = [24, 0], sizes = [8, 512], strides = [1, 1]} : vector<64x512xf32> to vector<8x512xf32>
    %201 = arith.truncf %199 : vector<8x128xf32> to vector<8x128xbf16>
    %cst_63 = arith.constant dense<0.000000e+00> : vector<8x512xf32>
    %202 = tpu.matmul %201, %92, %cst_63 {dimension_numbers = #tpu.dot_dimension_numbers<[1], [0], [0], [1], [0, 0, 1, 1], [], []>} : vector<8x128xbf16>, vector<128x512xbf16>, vector<8x512xf32> -> vector<8x512xf32>
    %203 = arith.addf %200, %202 : vector<8x512xf32>
    %204 = vector.extract_strided_slice %203 {offsets = [0, 0], sizes = [8, 128], strides = [1, 1]} : vector<8x512xf32> to vector<8x128xf32>
    %cst_64 = arith.constant 5.000000e-01 : f32
    %205 = vector.broadcast %cst_64 : f32 to vector<8x128xf32>
    %206 = arith.mulf %205, %204 : vector<8x128xf32>
    %207 = math.tanh %206 : vector<8x128xf32>
    %cst_65 = arith.constant 5.000000e-01 : f32
    %208 = vector.broadcast %cst_65 : f32 to vector<8x128xf32>
    %209 = arith.mulf %208, %207 : vector<8x128xf32>
    %cst_66 = arith.constant 5.000000e-01 : f32
    %210 = vector.broadcast %cst_66 : f32 to vector<8x128xf32>
    %211 = arith.addf %209, %210 : vector<8x128xf32>
    %212 = vector.extract_strided_slice %203 {offsets = [0, 128], sizes = [8, 128], strides = [1, 1]} : vector<8x512xf32> to vector<8x128xf32>
    %cst_67 = arith.constant 5.000000e-01 : f32
    %213 = vector.broadcast %cst_67 : f32 to vector<8x128xf32>
    %214 = arith.mulf %213, %212 : vector<8x128xf32>
    %215 = math.tanh %214 : vector<8x128xf32>
    %cst_68 = arith.constant 5.000000e-01 : f32
    %216 = vector.broadcast %cst_68 : f32 to vector<8x128xf32>
    %217 = arith.mulf %216, %215 : vector<8x128xf32>
    %cst_69 = arith.constant 5.000000e-01 : f32
    %218 = vector.broadcast %cst_69 : f32 to vector<8x128xf32>
    %219 = arith.addf %217, %218 : vector<8x128xf32>
    %220 = vector.extract_strided_slice %203 {offsets = [0, 256], sizes = [8, 128], strides = [1, 1]} : vector<8x512xf32> to vector<8x128xf32>
    %221 = math.tanh %220 : vector<8x128xf32>
    %222 = vector.extract_strided_slice %203 {offsets = [0, 384], sizes = [8, 128], strides = [1, 1]} : vector<8x512xf32> to vector<8x128xf32>
    %cst_70 = arith.constant 5.000000e-01 : f32
    %223 = vector.broadcast %cst_70 : f32 to vector<8x128xf32>
    %224 = arith.mulf %223, %222 : vector<8x128xf32>
    %225 = math.tanh %224 : vector<8x128xf32>
    %cst_71 = arith.constant 5.000000e-01 : f32
    %226 = vector.broadcast %cst_71 : f32 to vector<8x128xf32>
    %227 = arith.mulf %226, %225 : vector<8x128xf32>
    %cst_72 = arith.constant 5.000000e-01 : f32
    %228 = vector.broadcast %cst_72 : f32 to vector<8x128xf32>
    %229 = arith.addf %227, %228 : vector<8x128xf32>
    %230 = arith.mulf %219, %197 : vector<8x128xf32>
    %231 = arith.mulf %211, %221 : vector<8x128xf32>
    %232 = arith.addf %230, %231 : vector<8x128xf32>
    %233 = math.tanh %232 : vector<8x128xf32>
    %234 = arith.mulf %229, %233 : vector<8x128xf32>
    %235 = vector.extract_strided_slice %91 {offsets = [32, 0], sizes = [8, 512], strides = [1, 1]} : vector<64x512xf32> to vector<8x512xf32>
    %236 = arith.truncf %234 : vector<8x128xf32> to vector<8x128xbf16>
    %cst_73 = arith.constant dense<0.000000e+00> : vector<8x512xf32>
    %237 = tpu.matmul %236, %92, %cst_73 {dimension_numbers = #tpu.dot_dimension_numbers<[1], [0], [0], [1], [0, 0, 1, 1], [], []>} : vector<8x128xbf16>, vector<128x512xbf16>, vector<8x512xf32> -> vector<8x512xf32>
    %238 = arith.addf %235, %237 : vector<8x512xf32>
    %239 = vector.extract_strided_slice %238 {offsets = [0, 0], sizes = [8, 128], strides = [1, 1]} : vector<8x512xf32> to vector<8x128xf32>
    %cst_74 = arith.constant 5.000000e-01 : f32
    %240 = vector.broadcast %cst_74 : f32 to vector<8x128xf32>
    %241 = arith.mulf %240, %239 : vector<8x128xf32>
    %242 = math.tanh %241 : vector<8x128xf32>
    %cst_75 = arith.constant 5.000000e-01 : f32
    %243 = vector.broadcast %cst_75 : f32 to vector<8x128xf32>
    %244 = arith.mulf %243, %242 : vector<8x128xf32>
    %cst_76 = arith.constant 5.000000e-01 : f32
    %245 = vector.broadcast %cst_76 : f32 to vector<8x128xf32>
    %246 = arith.addf %244, %245 : vector<8x128xf32>
    %247 = vector.extract_strided_slice %238 {offsets = [0, 128], sizes = [8, 128], strides = [1, 1]} : vector<8x512xf32> to vector<8x128xf32>
    %cst_77 = arith.constant 5.000000e-01 : f32
    %248 = vector.broadcast %cst_77 : f32 to vector<8x128xf32>
    %249 = arith.mulf %248, %247 : vector<8x128xf32>
    %250 = math.tanh %249 : vector<8x128xf32>
    %cst_78 = arith.constant 5.000000e-01 : f32
    %251 = vector.broadcast %cst_78 : f32 to vector<8x128xf32>
    %252 = arith.mulf %251, %250 : vector<8x128xf32>
    %cst_79 = arith.constant 5.000000e-01 : f32
    %253 = vector.broadcast %cst_79 : f32 to vector<8x128xf32>
    %254 = arith.addf %252, %253 : vector<8x128xf32>
    %255 = vector.extract_strided_slice %238 {offsets = [0, 256], sizes = [8, 128], strides = [1, 1]} : vector<8x512xf32> to vector<8x128xf32>
    %256 = math.tanh %255 : vector<8x128xf32>
    %257 = vector.extract_strided_slice %238 {offsets = [0, 384], sizes = [8, 128], strides = [1, 1]} : vector<8x512xf32> to vector<8x128xf32>
    %cst_80 = arith.constant 5.000000e-01 : f32
    %258 = vector.broadcast %cst_80 : f32 to vector<8x128xf32>
    %259 = arith.mulf %258, %257 : vector<8x128xf32>
    %260 = math.tanh %259 : vector<8x128xf32>
    %cst_81 = arith.constant 5.000000e-01 : f32
    %261 = vector.broadcast %cst_81 : f32 to vector<8x128xf32>
    %262 = arith.mulf %261, %260 : vector<8x128xf32>
    %cst_82 = arith.constant 5.000000e-01 : f32
    %263 = vector.broadcast %cst_82 : f32 to vector<8x128xf32>
    %264 = arith.addf %262, %263 : vector<8x128xf32>
    %265 = arith.mulf %254, %232 : vector<8x128xf32>
    %266 = arith.mulf %246, %256 : vector<8x128xf32>
    %267 = arith.addf %265, %266 : vector<8x128xf32>
    %268 = math.tanh %267 : vector<8x128xf32>
    %269 = arith.mulf %264, %268 : vector<8x128xf32>
    %270 = vector.extract_strided_slice %91 {offsets = [40, 0], sizes = [8, 512], strides = [1, 1]} : vector<64x512xf32> to vector<8x512xf32>
    %271 = arith.truncf %269 : vector<8x128xf32> to vector<8x128xbf16>
    %cst_83 = arith.constant dense<0.000000e+00> : vector<8x512xf32>
    %272 = tpu.matmul %271, %92, %cst_83 {dimension_numbers = #tpu.dot_dimension_numbers<[1], [0], [0], [1], [0, 0, 1, 1], [], []>} : vector<8x128xbf16>, vector<128x512xbf16>, vector<8x512xf32> -> vector<8x512xf32>
    %273 = arith.addf %270, %272 : vector<8x512xf32>
    %274 = vector.extract_strided_slice %273 {offsets = [0, 0], sizes = [8, 128], strides = [1, 1]} : vector<8x512xf32> to vector<8x128xf32>
    %cst_84 = arith.constant 5.000000e-01 : f32
    %275 = vector.broadcast %cst_84 : f32 to vector<8x128xf32>
    %276 = arith.mulf %275, %274 : vector<8x128xf32>
    %277 = math.tanh %276 : vector<8x128xf32>
    %cst_85 = arith.constant 5.000000e-01 : f32
    %278 = vector.broadcast %cst_85 : f32 to vector<8x128xf32>
    %279 = arith.mulf %278, %277 : vector<8x128xf32>
    %cst_86 = arith.constant 5.000000e-01 : f32
    %280 = vector.broadcast %cst_86 : f32 to vector<8x128xf32>
    %281 = arith.addf %279, %280 : vector<8x128xf32>
    %282 = vector.extract_strided_slice %273 {offsets = [0, 128], sizes = [8, 128], strides = [1, 1]} : vector<8x512xf32> to vector<8x128xf32>
    %cst_87 = arith.constant 5.000000e-01 : f32
    %283 = vector.broadcast %cst_87 : f32 to vector<8x128xf32>
    %284 = arith.mulf %283, %282 : vector<8x128xf32>
    %285 = math.tanh %284 : vector<8x128xf32>
    %cst_88 = arith.constant 5.000000e-01 : f32
    %286 = vector.broadcast %cst_88 : f32 to vector<8x128xf32>
    %287 = arith.mulf %286, %285 : vector<8x128xf32>
    %cst_89 = arith.constant 5.000000e-01 : f32
    %288 = vector.broadcast %cst_89 : f32 to vector<8x128xf32>
    %289 = arith.addf %287, %288 : vector<8x128xf32>
    %290 = vector.extract_strided_slice %273 {offsets = [0, 256], sizes = [8, 128], strides = [1, 1]} : vector<8x512xf32> to vector<8x128xf32>
    %291 = math.tanh %290 : vector<8x128xf32>
    %292 = vector.extract_strided_slice %273 {offsets = [0, 384], sizes = [8, 128], strides = [1, 1]} : vector<8x512xf32> to vector<8x128xf32>
    %cst_90 = arith.constant 5.000000e-01 : f32
    %293 = vector.broadcast %cst_90 : f32 to vector<8x128xf32>
    %294 = arith.mulf %293, %292 : vector<8x128xf32>
    %295 = math.tanh %294 : vector<8x128xf32>
    %cst_91 = arith.constant 5.000000e-01 : f32
    %296 = vector.broadcast %cst_91 : f32 to vector<8x128xf32>
    %297 = arith.mulf %296, %295 : vector<8x128xf32>
    %cst_92 = arith.constant 5.000000e-01 : f32
    %298 = vector.broadcast %cst_92 : f32 to vector<8x128xf32>
    %299 = arith.addf %297, %298 : vector<8x128xf32>
    %300 = arith.mulf %289, %267 : vector<8x128xf32>
    %301 = arith.mulf %281, %291 : vector<8x128xf32>
    %302 = arith.addf %300, %301 : vector<8x128xf32>
    %303 = math.tanh %302 : vector<8x128xf32>
    %304 = arith.mulf %299, %303 : vector<8x128xf32>
    %305 = vector.extract_strided_slice %91 {offsets = [48, 0], sizes = [8, 512], strides = [1, 1]} : vector<64x512xf32> to vector<8x512xf32>
    %306 = arith.truncf %304 : vector<8x128xf32> to vector<8x128xbf16>
    %cst_93 = arith.constant dense<0.000000e+00> : vector<8x512xf32>
    %307 = tpu.matmul %306, %92, %cst_93 {dimension_numbers = #tpu.dot_dimension_numbers<[1], [0], [0], [1], [0, 0, 1, 1], [], []>} : vector<8x128xbf16>, vector<128x512xbf16>, vector<8x512xf32> -> vector<8x512xf32>
    %308 = arith.addf %305, %307 : vector<8x512xf32>
    %309 = vector.extract_strided_slice %308 {offsets = [0, 0], sizes = [8, 128], strides = [1, 1]} : vector<8x512xf32> to vector<8x128xf32>
    %cst_94 = arith.constant 5.000000e-01 : f32
    %310 = vector.broadcast %cst_94 : f32 to vector<8x128xf32>
    %311 = arith.mulf %310, %309 : vector<8x128xf32>
    %312 = math.tanh %311 : vector<8x128xf32>
    %cst_95 = arith.constant 5.000000e-01 : f32
    %313 = vector.broadcast %cst_95 : f32 to vector<8x128xf32>
    %314 = arith.mulf %313, %312 : vector<8x128xf32>
    %cst_96 = arith.constant 5.000000e-01 : f32
    %315 = vector.broadcast %cst_96 : f32 to vector<8x128xf32>
    %316 = arith.addf %314, %315 : vector<8x128xf32>
    %317 = vector.extract_strided_slice %308 {offsets = [0, 128], sizes = [8, 128], strides = [1, 1]} : vector<8x512xf32> to vector<8x128xf32>
    %cst_97 = arith.constant 5.000000e-01 : f32
    %318 = vector.broadcast %cst_97 : f32 to vector<8x128xf32>
    %319 = arith.mulf %318, %317 : vector<8x128xf32>
    %320 = math.tanh %319 : vector<8x128xf32>
    %cst_98 = arith.constant 5.000000e-01 : f32
    %321 = vector.broadcast %cst_98 : f32 to vector<8x128xf32>
    %322 = arith.mulf %321, %320 : vector<8x128xf32>
    %cst_99 = arith.constant 5.000000e-01 : f32
    %323 = vector.broadcast %cst_99 : f32 to vector<8x128xf32>
    %324 = arith.addf %322, %323 : vector<8x128xf32>
    %325 = vector.extract_strided_slice %308 {offsets = [0, 256], sizes = [8, 128], strides = [1, 1]} : vector<8x512xf32> to vector<8x128xf32>
    %326 = math.tanh %325 : vector<8x128xf32>
    %327 = vector.extract_strided_slice %308 {offsets = [0, 384], sizes = [8, 128], strides = [1, 1]} : vector<8x512xf32> to vector<8x128xf32>
    %cst_100 = arith.constant 5.000000e-01 : f32
    %328 = vector.broadcast %cst_100 : f32 to vector<8x128xf32>
    %329 = arith.mulf %328, %327 : vector<8x128xf32>
    %330 = math.tanh %329 : vector<8x128xf32>
    %cst_101 = arith.constant 5.000000e-01 : f32
    %331 = vector.broadcast %cst_101 : f32 to vector<8x128xf32>
    %332 = arith.mulf %331, %330 : vector<8x128xf32>
    %cst_102 = arith.constant 5.000000e-01 : f32
    %333 = vector.broadcast %cst_102 : f32 to vector<8x128xf32>
    %334 = arith.addf %332, %333 : vector<8x128xf32>
    %335 = arith.mulf %324, %302 : vector<8x128xf32>
    %336 = arith.mulf %316, %326 : vector<8x128xf32>
    %337 = arith.addf %335, %336 : vector<8x128xf32>
    %338 = math.tanh %337 : vector<8x128xf32>
    %339 = arith.mulf %334, %338 : vector<8x128xf32>
    %340 = vector.extract_strided_slice %91 {offsets = [56, 0], sizes = [8, 512], strides = [1, 1]} : vector<64x512xf32> to vector<8x512xf32>
    %341 = arith.truncf %339 : vector<8x128xf32> to vector<8x128xbf16>
    %cst_103 = arith.constant dense<0.000000e+00> : vector<8x512xf32>
    %342 = tpu.matmul %341, %92, %cst_103 {dimension_numbers = #tpu.dot_dimension_numbers<[1], [0], [0], [1], [0, 0, 1, 1], [], []>} : vector<8x128xbf16>, vector<128x512xbf16>, vector<8x512xf32> -> vector<8x512xf32>
    %343 = arith.addf %340, %342 : vector<8x512xf32>
    %344 = vector.extract_strided_slice %343 {offsets = [0, 0], sizes = [8, 128], strides = [1, 1]} : vector<8x512xf32> to vector<8x128xf32>
    %cst_104 = arith.constant 5.000000e-01 : f32
    %345 = vector.broadcast %cst_104 : f32 to vector<8x128xf32>
    %346 = arith.mulf %345, %344 : vector<8x128xf32>
    %347 = math.tanh %346 : vector<8x128xf32>
    %cst_105 = arith.constant 5.000000e-01 : f32
    %348 = vector.broadcast %cst_105 : f32 to vector<8x128xf32>
    %349 = arith.mulf %348, %347 : vector<8x128xf32>
    %cst_106 = arith.constant 5.000000e-01 : f32
    %350 = vector.broadcast %cst_106 : f32 to vector<8x128xf32>
    %351 = arith.addf %349, %350 : vector<8x128xf32>
    %352 = vector.extract_strided_slice %343 {offsets = [0, 128], sizes = [8, 128], strides = [1, 1]} : vector<8x512xf32> to vector<8x128xf32>
    %cst_107 = arith.constant 5.000000e-01 : f32
    %353 = vector.broadcast %cst_107 : f32 to vector<8x128xf32>
    %354 = arith.mulf %353, %352 : vector<8x128xf32>
    %355 = math.tanh %354 : vector<8x128xf32>
    %cst_108 = arith.constant 5.000000e-01 : f32
    %356 = vector.broadcast %cst_108 : f32 to vector<8x128xf32>
    %357 = arith.mulf %356, %355 : vector<8x128xf32>
    %cst_109 = arith.constant 5.000000e-01 : f32
    %358 = vector.broadcast %cst_109 : f32 to vector<8x128xf32>
    %359 = arith.addf %357, %358 : vector<8x128xf32>
    %360 = vector.extract_strided_slice %343 {offsets = [0, 256], sizes = [8, 128], strides = [1, 1]} : vector<8x512xf32> to vector<8x128xf32>
    %361 = math.tanh %360 : vector<8x128xf32>
    %362 = vector.extract_strided_slice %343 {offsets = [0, 384], sizes = [8, 128], strides = [1, 1]} : vector<8x512xf32> to vector<8x128xf32>
    %cst_110 = arith.constant 5.000000e-01 : f32
    %363 = vector.broadcast %cst_110 : f32 to vector<8x128xf32>
    %364 = arith.mulf %363, %362 : vector<8x128xf32>
    %365 = math.tanh %364 : vector<8x128xf32>
    %cst_111 = arith.constant 5.000000e-01 : f32
    %366 = vector.broadcast %cst_111 : f32 to vector<8x128xf32>
    %367 = arith.mulf %366, %365 : vector<8x128xf32>
    %cst_112 = arith.constant 5.000000e-01 : f32
    %368 = vector.broadcast %cst_112 : f32 to vector<8x128xf32>
    %369 = arith.addf %367, %368 : vector<8x128xf32>
    %370 = arith.mulf %359, %337 : vector<8x128xf32>
    %371 = arith.mulf %351, %361 : vector<8x128xf32>
    %372 = arith.addf %370, %371 : vector<8x128xf32>
    %373 = math.tanh %372 : vector<8x128xf32>
    %374 = arith.mulf %369, %373 : vector<8x128xf32>
    %375 = tpu.concatenate %129, %164, %199, %234, %269, %304, %339, %374 in 0 : vector<8x128xf32>, vector<8x128xf32>, vector<8x128xf32>, vector<8x128xf32>, vector<8x128xf32>, vector<8x128xf32>, vector<8x128xf32>, vector<8x128xf32> -> vector<64x128xf32>
    %376 = arith.truncf %375 : vector<64x128xf32> to vector<64x128xbf16>
    %c0_113 = arith.constant 0 : index
    %c0_114 = arith.constant 0 : index
    %377 = vector.load %arg4[%c0_113, %c0_114] : memref<128x24xbf16, #tpu.memory_space<vmem>>, vector<128x24xbf16>
    %cst_115 = arith.constant dense<0.000000e+00> : vector<64x24xf32>
    %378 = tpu.matmul %376, %377, %cst_115 {dimension_numbers = #tpu.dot_dimension_numbers<[1], [0], [0], [1], [0, 0, 1, 1], [], []>} : vector<64x128xbf16>, vector<128x24xbf16>, vector<64x24xf32> -> vector<64x24xf32>
    %c0_116 = arith.constant 0 : index
    %c0_117 = arith.constant 0 : index
    %379 = vector.load %arg5[%c0_116, %c0_117] : memref<1x24xf32, #tpu.memory_space<vmem>>, vector<1x24xf32>
    %380 = vector.broadcast %379 : vector<1x24xf32> to vector<64x24xf32>
    %381 = arith.addf %378, %380 : vector<64x24xf32>
    %382 = vector.extract_strided_slice %381 {offsets = [0, 0], sizes = [64, 16], strides = [1, 1]} : vector<64x24xf32> to vector<64x16xf32>
    %cst_118 = arith.constant dense<0xFF800000> : vector<64xf32>
    %383 = vector.multi_reduction <maximumf>, %382, %cst_118 [1] : vector<64x16xf32> to vector<64xf32>
    %384 = vector.shape_cast %383 : vector<64xf32> to vector<64x1xf32>
    %385 = vector.broadcast %384 : vector<64x1xf32> to vector<64x16xf32>
    %386 = arith.subf %382, %385 : vector<64x16xf32>
    %387 = math.exp %386 : vector<64x16xf32>
    %cst_119 = arith.constant dense<0.000000e+00> : vector<64xf32>
    %388 = vector.multi_reduction <add>, %387, %cst_119 [1] : vector<64x16xf32> to vector<64xf32>
    %389 = vector.shape_cast %388 : vector<64xf32> to vector<64x1xf32>
    %390 = math.log %389 : vector<64x1xf32>
    %391 = vector.broadcast %390 : vector<64x1xf32> to vector<64x16xf32>
    %392 = arith.subf %386, %391 : vector<64x16xf32>
    %393 = vector.extract_strided_slice %381 {offsets = [0, 16], sizes = [64, 8], strides = [1, 1]} : vector<64x24xf32> to vector<64x8xf32>
    %cst_120 = arith.constant dense<0xFF800000> : vector<64xf32>
    %394 = vector.multi_reduction <maximumf>, %393, %cst_120 [1] : vector<64x8xf32> to vector<64xf32>
    %395 = vector.shape_cast %394 : vector<64xf32> to vector<64x1xf32>
    %396 = vector.broadcast %395 : vector<64x1xf32> to vector<64x8xf32>
    %397 = arith.subf %393, %396 : vector<64x8xf32>
    %398 = math.exp %397 : vector<64x8xf32>
    %cst_121 = arith.constant dense<0.000000e+00> : vector<64xf32>
    %399 = vector.multi_reduction <add>, %398, %cst_121 [1] : vector<64x8xf32> to vector<64xf32>
    %400 = vector.shape_cast %399 : vector<64xf32> to vector<64x1xf32>
    %401 = math.log %400 : vector<64x1xf32>
    %402 = vector.broadcast %401 : vector<64x1xf32> to vector<64x8xf32>
    %403 = arith.subf %397, %402 : vector<64x8xf32>
    %404 = tpu.concatenate %392, %403 in 1 : vector<64x16xf32>, vector<64x8xf32> -> vector<64x24xf32>
    %c0_122 = arith.constant 0 : index
    %c0_123 = arith.constant 0 : index
    %405 = vector.load %arg6[%c0_122, %c0_123] : memref<64x24xf32, #tpu.memory_space<vmem>>, vector<64x24xf32>
    tpu.vector_store %arg6[%c0_122, %c0_123], %404 {strides = array<i32>} : memref<64x24xf32, #tpu.memory_space<vmem>>, vector<64x24xf32>,
    return
  }
}

</mosaic_0001>

<bundles_post_ra>
// kernel: jazz_melody_lstm_forward.1
= control target key start
LH: loop header
LB: loop body
LE: loop exit
PB: predicated region body
PF: predicated region fallthrough
CT: control target
= control target key end

     0   :  { %11 = vsyncpa [#allocation4], 0  ;;  %s3455_s0 = inlined_call_operand.vmem [shape: s32[2,8], index: 0, kind: input, shape index: {}]   ;;  %s3456_s1 = inlined_call_operand.vmem [shape: f32[16,512], index: 1, kind: input, shape index: {}]   ;;  %s3457_s2 = inlined_call_operand.vmem [shape: f32[1,512], index: 2, kind: input, shape index: {}]   ;;  %s3458_s3 = inlined_call_operand.hbm [shape: bf16[128,512], index: 3, kind: input, shape index: {}]   ;;  %s3459_s4 = inlined_call_operand.vmem [shape: bf16[128,24], index: 4, kind: input, shape index: {}]   ;;  %s3460_s5 = inlined_call_operand.vmem [shape: f32[1,24], index: 5, kind: input, shape index: {}]   ;;  %s3461_s6 = inlined_call_operand.vmem [shape: f32[64,24], index: 6, kind: output, shape index: {}]  }
   0x1   :  { %s19_s23 = sshll.u32 %s3455_s0, 4  ;;  %s20_s23 = int_to_ptr.vmem [resolvable:$true] %s19_s23 }
   0x2   :  { %12 = vsyncpa [#allocation3], 0  ;;  %s2429_s24 = scalar_lea.vmem %s20_s23, 32  ;;  %p2434_p1 = scmp.lt.s32.totalorder %s20_s23, %s20_s23 }
   0x3   :  { %p2430_p0 = scmp.ne.s32.totalorder %s20_s23, %s2429_s24  ;;  %p2435_p2 = scmp.lt.s32.totalorder %s2429_s24, %s2429_s24 }
   0x5   :  { %p2436_p3 = por %p2435_p2, %p2434_p1 }
   0x7   :  { %p2437_p4 = pnand %p2436_p3, %p2430_p0 }
   0x9   :  { %2440 = shalt.err (!%p2437_p4)
}
   0xa   :  { %s2465_s25 = smov [#allocation2]   ;;  %s2466_s26 = smov [#allocation5]  }
   0xb   :  { %22 = dma.vmem_to_smem %s20_s23, 32, %s2465_s25, [#allocation4]  }
   0xc   :  { %s32_s27 = sshll.u32 %s2466_s26, 4  ;;  %s33_s27 = int_to_ptr.vmem [resolvable:$true] %s32_s27 }
   0xd   :  { %s2449_s28 = scalar_lea.vmem %s33_s27, 4096  ;;  %p2454_p6 = scmp.lt.s32.totalorder %s33_s27, %s33_s27 }
   0xe   :  { %p2450_p5 = scmp.ne.s32.totalorder %s33_s27, %s2449_s28  ;;  %p2455_p7 = scmp.lt.s32.totalorder %s2449_s28, %s2449_s28 }
  0x10   :  { %p2456_p8 = por %p2455_p7, %p2454_p6 }
  0x12   :  { %p2457_p9 = pnand %p2456_p8, %p2450_p5 }
  0x14   :  { %2460 = shalt.err (!%p2457_p9)
}
  0x15   :  { %s2467_s0 = smov 256   ;;  %s2468_s29 = smov 16  }
  0x16   :  { %38 = dma.hbm_to_vmem [thread:$0]  %s3458_s3, 4096, %s33_s27, [#allocation3], %s2467_s0, %s2467_s0, %s2468_s29  }
  0x17   :  { %2461 = dma.done.wait [#allocation4], 32  }
  0x18   :  { %2462 = vsyncadd [#allocation4], 4294967264 }
  0x19   :  { %2463 = dma.done.wait [#allocation3], 4096  }
  0x1a   :  { %2464 = vsyncadd [#allocation3], 4294963200 }
  0x1b   :  { %49 = sfence }
  0x1c   :  { %v381_v0 = vld [vmem:[%s3456_s1 + $0x38] sm:$0xff]  ;;  %v380_v1 = vld [vmem:[%s3456_s1 + $0x30] sm:$0xff]  ;;  %v51_v3 = vlaneseq  ;;  %s68_s14 = sld [smem:[#allocation2]]  ;;  %v2469_v5 = vmov 0.0   ;;  %vm404_vm3 = vcmask 130048   ;;  %v379_v37 = vld [vmem:[%s3456_s1 + $0x28] sm:$0xff] }
  0x1d   :  { %v377_v2 = vld [vmem:[%s3456_s1 + $0x18] sm:$0xff]  ;;  %570 = vmatprep.subr.mxu1 %v381_v0  ;;  %v376_v4 = vld [vmem:[%s3456_s1 + $0x10] sm:$0xff]  ;;  %606 = vmatprep.mubr.f32.mxu1 %v2469_v5  ;;  %s2075_s16 = sld [smem:[#allocation2 + $0x80]]  ;;  %v378_v42 = vld [vmem:[%s3456_s1 + $0x20] sm:$0xff] }
  0x1e   :  { %571 = vmatpush1.msra.mxu1 %v380_v1  ;;  %v2526_v6 = vld [vmem:[#allocation5 + $0xe4] ss:$16 sps:$4 sm:$0xff]   ;;  %v2528_v7 = vshrl.u32 %v51_v3, 7  ;;  %493 = vmatprep.mubr.f32.mxu0 %v2469_v5  ;;  %s2076_s17 = sld [smem:[#allocation2 + $0x1]]  ;;  %v2535_v9 = vand.u32 127, %v51_v3  ;;  %v375_v45 = vld [vmem:[%s3456_s1 + $0x8] sm:$0xff] }
  0x1f   :  { %572 = vmatprep.subr.mxu1 %v377_v2  ;;  %s2077_s18 = sld [smem:[#allocation2 + $0x81]]  ;;  %v2537_v11 = vld [vmem:[#allocation5 + $0xe0] ss:$16 sps:$4 sm:$0xff]   ;;  %v2548_v17 = vld [vmem:[#allocation5 + $0xc4] ss:$16 sps:$4 sm:$0xff]   ;;  %457 = vmatprep.subr.mxu0 %v379_v37 }
  0x20   :  { %573 = vmatpush1.msra.mxu1 %v376_v4  ;;  %vm60_vm0 = vcmp.eq.s32.totalorder %v2528_v7, 0  ;;  %v53_v8 = vadd.s32 8, %v2528_v7  ;;  %vm78_vm1 = vcmp.eq.s32.totalorder %v2528_v7, 1  ;;  %v54_v12 = vadd.s32 16, %v2528_v7  ;;  %s2540_s19 = sld [smem:[#allocation2 + $0x2]]  ;;  %458 = vmatpush1.msra.mxu0 %v378_v42  ;;  %v374_v53 = vld [vmem:[%s3456_s1] sm:$0xff] }
  0x21   :  { %847 = vmatprep.subr.bf16.mxu1 %v2526_v6  ;;  %s2542_s20 = sld [smem:[#allocation2 + $0x82]]  ;;  %v55_v16 = vadd.s32 24, %v2528_v7  ;;  %v2555_v22 = vld [vmem:[#allocation5 + $0xc0] ss:$16 sps:$4 sm:$0xff]   ;;  %v2559_v24 = vld [vmem:[#allocation5 + $0xa4] ss:$16 sps:$4 sm:$0xff]   ;;  %459 = vmatprep.subr.mxu0 %v375_v45 }
  0x22   :  { %v69_v10 = vstv %s68_s14  ;;  %vm97_vm2 = vcmp.eq.s32.totalorder %v53_v8, 8  ;;  %vm115_vm4 = vcmp.eq.s32.totalorder %v53_v8, 9  ;;  %s2545_s21 = sld [smem:[#allocation2 + $0x3]]  ;;  %vm134_vm6 = vcmp.eq.s32.totalorder %v54_v12, 16  ;;  %v2580_v32 = vld [vmem:[#allocation5 + $0xa0] ss:$16 sps:$4 sm:$0xff]   ;;  %460 = vmatpush1.msra.mxu0 %v374_v53 }
  0x23   :  { %v70_v13 = vsel %vm60_vm0, %v69_v10, 0  ;;  %v87_v14 = vstv %s2075_s16  ;;  %s2550_s22 = sld [smem:[#allocation2 + $0x83]]  ;;  %vm152_vm7 = vcmp.eq.s32.totalorder %v54_v12, 17  ;;  %v56_v25 = vadd.s32 32, %v2528_v7  ;;  %v2588_v34 = vld [vmem:[#allocation5 + $0x84] ss:$16 sps:$4 sm:$0xff]   ;;  %952 = vmatprep.subr.bf16.mxu0 %v2526_v6 }
  0x24   :  { %v88_v15 = vsel %vm78_vm1, %v87_v14, %v70_v13  ;;  %v105_v18 = vstv %s2076_s17  ;;  %s2562_s23 = sld [smem:[#allocation2 + $0x4]]  ;;  %vm171_vm9 = vcmp.eq.s32.totalorder %v55_v16, 24  ;;  %vm189_vm10 = vcmp.eq.s32.totalorder %v55_v16, 25  ;;  %v2622_v47 = vld [vmem:[#allocation5 + $0x80] ss:$16 sps:$4 sm:$0xff]  }
  0x25   :  { %vm350_vm5 = vcmp.eq.s32.totalorder %v88_v15, %v2535_v9  ;;  %v107_v20 = vsel %vm97_vm2, %v105_v18, 0  ;;  %v123_v21 = vstv %s2077_s18  ;;  %s2568_s24 = sld [smem:[#allocation2 + $0x84]]  ;;  %v57_v30 = vadd.s32 40, %v2528_v7  ;;  %v2639_v54 = vld [vmem:[#allocation5 + $0x64] ss:$16 sps:$4 sm:$0xff]  }
  0x26   :  { %v2553_v19 = vsel %vm350_vm5, 1.0, %v2469_v5  ;;  %v125_v23 = vsel %vm115_vm4, %v123_v21, %v107_v20  ;;  %v141_v26 = vstv %s2540_s19  ;;  %s2577_s25 = sld [smem:[#allocation2 + $0x5]]  ;;  %vm208_vm12 = vcmp.eq.s32.totalorder %v56_v25, 32  ;;  %v2654_v60 = vld [vmem:[#allocation5 + $0x60] ss:$16 sps:$4 sm:$0xff]  }
  0x27   :  { %2106 = vmatmul.mubr.msk.f32.vlgmr.msra.gmra.mxu1 %vm404_vm3, %v2553_v19  ;;  %vm351_vm8 = vcmp.eq.s32.totalorder %v125_v23, %v2535_v9  ;;  %v144_v28 = vsel %vm134_vm6, %v141_v26, 0  ;;  %v159_v29 = vstv %s2542_s20  ;;  %s2583_s26 = sld [smem:[#allocation2 + $0x85]]  ;;  %vm226_vm13 = vcmp.eq.s32.totalorder %v56_v25, 33  ;;  %2098 = vmatmul.mubr.msk.f32.vlgmr.msra.gmra.mxu0 %vm404_vm3, %v2553_v19  ;;  %v2657_v61 = vld [vmem:[#allocation5 + $0x44] ss:$16 sps:$4 sm:$0xff]  }
  0x28   :  { %848 = vmatpush1.bf16.msra.mxu1 %v2537_v11  ;;  %612 = vmatprep.mubr.f32.mxu1 %v2469_v5  ;;  %v2572_v27 = vsel %vm351_vm8, 1.0, %v2469_v5  ;;  %v162_v31 = vsel %vm152_vm7, %v159_v29, %v144_v28  ;;  %v177_v33 = vstv %s2545_s21  ;;  %v58_v40 = vadd.s32 48, %v2528_v7  ;;  %s2602_s0 = sld [smem:[#allocation2 + $0x6]]  ;;  %v2672_v4 = vld [vmem:[#allocation5 + $0x40] ss:$16 sps:$4 sm:$0xff]  }
  0x29   :  { %849 = vmatprep.subr.bf16.mxu1 %v2548_v17  ;;  %vm352_vm11 = vcmp.eq.s32.totalorder %v162_v31, %v2535_v9  ;;  %v181_v35 = vsel %vm171_vm9, %v177_v33, 0  ;;  %v195_v36 = vstv %s2550_s22  ;;  %vm245_vm15 = vcmp.eq.s32.totalorder %v57_v30, 40  ;;  %s2607_s29 = sld [smem:[#allocation2 + $0x86]]  ;;  %953 = vmatpush1.bf16.msra.mxu0 %v2537_v11  ;;  %v2677_v8 = vld [vmem:[#allocation5 + $0x24] ss:$16 sps:$4 sm:$0xff]  }
  0x2a   :  { %v2598_v38 = vsel %vm352_vm11, 1.0, %v2469_v5  ;;  %v199_v39 = vsel %vm189_vm10, %v195_v36, %v181_v35  ;;  %v213_v41 = vstv %s2562_s23  ;;  %vm263_vm0 = vcmp.eq.s32.totalorder %v57_v30, 41  ;;  %s2627_s10 = sld [smem:[#allocation2 + $0x7]]  ;;  %499 = vmatprep.mubr.f32.mxu0 %v2469_v5  ;;  %954 = vmatprep.subr.bf16.mxu0 %v2548_v17  ;;  %v2680_v10 = vld [vmem:[#allocation5 + $0x20] ss:$16 sps:$4 sm:$0xff]  }
  0x2b   :  { %2107 = vmatmul.mubr.msk.f32.gmra.mxu1 %vm404_vm3, %v2572_v27  ;;  %vm353_vm14 = vcmp.eq.s32.totalorder %v199_v39, %v2535_v9  ;;  %v218_v43 = vsel %vm208_vm12, %v213_v41, 0  ;;  %v231_v44 = vstv %s2568_s24  ;;  %v59_v50 = vadd.s32 56, %v2528_v7  ;;  %s2633_s11 = sld [smem:[#allocation2 + $0x87]]  ;;  %2099 = vmatmul.mubr.msk.f32.gmra.mxu0 %vm404_vm3, %v2572_v27  ;;  %v2687_v13 = vld [vmem:[#allocation5 + $0x4] ss:$16 sps:$4 sm:$0xff]  }
  0x2c   :  { %850 = vmatpush1.bf16.msra.mxu1 %v2555_v22  ;;  %618 = vmatprep.mubr.f32.mxu1 %v2469_v5  ;;  %v2620_v46 = vsel %vm353_vm14, 1.0, %v2469_v5  ;;  %v236_v48 = vsel %vm226_vm13, %v231_v44, %v218_v43  ;;  %v249_v49 = vstv %s2577_s25  ;;  %vm282_vm1 = vcmp.eq.s32.totalorder %v58_v40, 48  ;;  %v2695_v14 = vld [vmem:[#allocation5] ss:$16 sps:$4 sm:$0xff]   ;;  %v2705_v15 = vld [vmem:[#allocation5 + $0xec] ss:$16 sps:$4 sm:$0xff]  }
  0x2d   :  { %851 = vmatprep.subr.bf16.mxu1 %v2559_v24  ;;  %v255_v51 = vsel %vm245_vm15, %v249_v49, 0  ;;  %v267_v52 = vstv %s2583_s26  ;;  %vm354_vm2 = vcmp.eq.s32.totalorder %v236_v48, %v2535_v9  ;;  %vm300_vm4 = vcmp.eq.s32.totalorder %v58_v40, 49  ;;  %955 = vmatpush1.bf16.msra.mxu0 %v2555_v22  ;;  %v2714_v18 = vld [vmem:[#allocation5 + $0xe8] ss:$16 sps:$4 sm:$0xff]   ;;  %v2717_v19 = vld [vmem:[#allocation5 + $0xcc] ss:$16 sps:$4 sm:$0xff]  }
  0x2e   :  { %v273_v55 = vsel %vm263_vm0, %v267_v52, %v255_v51  ;;  %v285_v56 = vstv %s2602_s0  ;;  %vm319_vm5 = vcmp.eq.s32.totalorder %v59_v50, 56  ;;  %v2094_v59 = vsel %vm354_vm2, 1.0, %v2469_v5  ;;  %505 = vmatprep.mubr.f32.mxu0 %v2469_v5  ;;  %956 = vmatprep.subr.bf16.mxu0 %v2559_v24  ;;  %v2725_v20 = vld [vmem:[#allocation5 + $0xc8] ss:$16 sps:$4 sm:$0xff]   ;;  %v2729_v21 = vld [vmem:[#allocation5 + $0xac] ss:$16 sps:$4 sm:$0xff]  }
  0x2f   :  { %2108 = vmatmul.mubr.msk.f32.gmra.mxu1 %vm404_vm3, %v2598_v38  ;;  %v292_v57 = vsel %vm282_vm1, %v285_v56, 0  ;;  %v303_v58 = vstv %s2607_s29  ;;  %vm337_vm6 = vcmp.eq.s32.totalorder %v59_v50, 57  ;;  %vm355_vm7 = vcmp.eq.s32.totalorder %v273_v55, %v2535_v9  ;;  %2100 = vmatmul.mubr.msk.f32.gmra.mxu0 %vm404_vm3, %v2598_v38  ;;  %v2737_v23 = vld [vmem:[#allocation5 + $0xa8] ss:$16 sps:$4 sm:$0xff]   ;;  %v2741_v25 = vld [vmem:[#allocation5 + $0x8c] ss:$16 sps:$4 sm:$0xff]  }
  0x30   :  { %852 = vmatpush1.bf16.msra.mxu1 %v2580_v32  ;;  %624 = vmatprep.mubr.f32.mxu1 %v2469_v5  ;;  %v310_v62 = vsel %vm300_vm4, %v303_v58, %v292_v57  ;;  %v321_v63 = vstv %s2627_s10  ;;  %v2095_v3 = vsel %vm355_vm7, 1.0, %v2469_v5  ;;  %v3462_v16 = vmov 0   ;;  %v2747_v26 = vld [vmem:[#allocation5 + $0x88] ss:$16 sps:$4 sm:$0xff]   ;;  %v2757_v28 = vld [vmem:[#allocation5 + $0x4c] ss:$16 sps:$4 sm:$0xff]  }
  0x31   :  { %853 = vmatprep.subr.bf16.mxu1 %v2588_v34  ;;  %v329_v0 = vsel %vm319_vm5, %v321_v63, 0  ;;  %v339_v1 = vstv %s2633_s11  ;;  %vm356_vm8 = vcmp.eq.s32.totalorder %v310_v62, %v2535_v9  ;;  %957 = vmatpush1.bf16.msra.mxu0 %v2580_v32  ;;  %v2754_v27 = vld [vmem:[#allocation5 + $0x68] ss:$16 sps:$4 sm:$0xff]   ;;  %v2763_v30 = vld [vmem:[#allocation5 + $0x2c] ss:$16 sps:$4 sm:$0xff]   ;;  %v394_v36 = vsub.s32 2, %v2528_v7 }
  0x32   :  { %v347_v2 = vsel %vm337_vm6, %v339_v1, %v329_v0  ;;  %v2096_v12 = vsel %vm356_vm8, 1.0, %v2469_v5  ;;  %511 = vmatprep.mubr.f32.mxu0 %v2469_v5  ;;  %958 = vmatprep.subr.bf16.mxu0 %v2588_v34  ;;  %v2760_v29 = vld [vmem:[#allocation5 + $0x48] ss:$16 sps:$4 sm:$0xff]   ;;  %v2769_v33 = vld [vmem:[#allocation5 + $0xc] ss:$16 sps:$4 sm:$0xff]   ;;  %v398_v39 = vsub.s32 3, %v2528_v7 }
  0x33   :  { %2109 = vmatmul.mubr.msk.f32.gmra.mxu1 %vm404_vm3, %v2620_v46  ;;  %vm357_vm9 = vcmp.eq.s32.totalorder %v347_v2, %v2535_v9  ;;  %2101 = vmatmul.mubr.msk.f32.gmra.mxu0 %vm404_vm3, %v2620_v46  ;;  %v2766_v31 = vld [vmem:[#allocation5 + $0x28] ss:$16 sps:$4 sm:$0xff]   ;;  %v382_v37 = vld [vmem:[%s3457_s2] sm:$0xf]  ;;  %v386_v58 = vsub.s32 0, %v2528_v7  ;;  %v390_v0 = vsub.s32 1, %v2528_v7 }
  0x34   :  { %854 = vmatpush1.bf16.msra.mxu1 %v2622_v47  ;;  %630 = vmatprep.mubr.f32.mxu1 %v2469_v5  ;;  %v2097_v9 = vsel %vm357_vm9, 1.0, %v2469_v5  ;;  %v2772_v35 = vld [vmem:[#allocation5 + $0x8] ss:$16 sps:$4 sm:$0xff]   ;;  %v2804_v41 = vrot.slane %v382_v37, %v394_v36  ;;  %v2806_v43 = vrot.slane %v382_v37, %v398_v39  ;;  %vm1922_vm10 = vcmask 195712  }
  0x35   :  { %855 = vmatprep.subr.bf16.mxu1 %v2639_v54  ;;  %959 = vmatpush1.bf16.msra.mxu0 %v2622_v47  ;;  %vm2003_vm11 = vcmask 64512   ;;  %vm2060_vm12 = vcmask 195584  }
  0x36   :  { %517 = vmatprep.mubr.f32.mxu0 %v2469_v5  ;;  %960 = vmatprep.subr.bf16.mxu0 %v2639_v54 }
  0x37   :  { %2110 = vmatmul.mubr.msk.f32.gmra.mxu1 %vm404_vm3, %v2094_v59  ;;  %2102 = vmatmul.mubr.msk.f32.gmra.mxu0 %vm404_vm3, %v2094_v59 }
  0x38   :  { %856 = vmatpush1.bf16.msra.mxu1 %v2654_v60  ;;  %636 = vmatprep.mubr.f32.mxu1 %v2469_v5 }
  0x39   :  { %857 = vmatprep.subr.bf16.mxu1 %v2657_v61  ;;  %961 = vmatpush1.bf16.msra.mxu0 %v2654_v60 }
  0x3a   :  { %523 = vmatprep.mubr.f32.mxu0 %v2469_v5  ;;  %962 = vmatprep.subr.bf16.mxu0 %v2657_v61 }
  0x3b   :  { %2111 = vmatmul.mubr.msk.f32.gmra.mxu1 %vm404_vm3, %v2095_v3  ;;  %2103 = vmatmul.mubr.msk.f32.gmra.mxu0 %vm404_vm3, %v2095_v3 }
  0x3c   :  { %858 = vmatpush1.bf16.msra.mxu1 %v2672_v4  ;;  %642 = vmatprep.mubr.f32.mxu1 %v2469_v5 }
  0x3d   :  { %859 = vmatprep.subr.bf16.mxu1 %v2677_v8  ;;  %963 = vmatpush1.bf16.msra.mxu0 %v2672_v4 }
  0x3e   :  { %529 = vmatprep.mubr.f32.mxu0 %v2469_v5  ;;  %964 = vmatprep.subr.bf16.mxu0 %v2677_v8 }
  0x3f   :  { %2112 = vmatmul.mubr.msk.f32.gmra.mxu1 %vm404_vm3, %v2096_v12  ;;  %2104 = vmatmul.mubr.msk.f32.gmra.mxu0 %vm404_vm3, %v2096_v12  ;;  %v2835_v12 = vrot.slane %v382_v37, %v386_v58 }
  0x40   :  { %860 = vmatpush1.bf16.msra.mxu1 %v2680_v10  ;;  %648 = vmatprep.mubr.f32.mxu1 %v2469_v5 }
  0x41   :  { %861 = vmatprep.subr.bf16.mxu1 %v2687_v13  ;;  %965 = vmatpush1.bf16.msra.mxu0 %v2680_v10 }
  0x42   :  { %535 = vmatprep.mubr.f32.mxu0 %v2469_v5  ;;  %966 = vmatprep.subr.bf16.mxu0 %v2687_v13  ;;  %v2751_v5 = vld [vmem:[#allocation5 + $0x6c] ss:$16 sps:$4 sm:$0xff]  }
  0x43   :  { %2113 = vmatmul.mubr.msk.f32.gmra.mxu1 %vm404_vm3, %v2097_v9  ;;  %2105 = vmatmul.mubr.msk.f32.gmra.mxu0 %vm404_vm3, %v2097_v9 }
  0x44   :  { %862 = vmatpush1.bf16.msra.mxu1 %v2695_v14  ;;  %879 = vmatprep.mubr.bf16.mxu1 %v3462_v16 }
  0x45   :  { %888 = vmatprep.subr.bf16.mxu1 %v2705_v15  ;;  %967 = vmatpush1.bf16.msra.mxu0 %v2695_v14 }
  0x46   :  { %984 = vmatprep.mubr.bf16.mxu0 %v3462_v16  ;;  %1057 = vmatprep.subr.bf16.mxu0 %v2526_v6 }
  0x47   :  { %880 = vmatmul.mubr.bf16.vlgmr.msra.gmra.mxu1 %v3462_v16 }
  0x48   :  { %889 = vmatpush1.bf16.msra.mxu1 %v2714_v18  ;;  %920 = vmatprep.mubr.bf16.mxu1 %v3462_v16 }
  0x49   :  { %890 = vmatprep.subr.bf16.mxu1 %v2717_v19 }
  0x4c   :  { %891 = vmatpush1.bf16.msra.mxu1 %v2725_v20 }
  0x4d   :  { %892 = vmatprep.subr.bf16.mxu1 %v2729_v21 }
  0x50   :  { %893 = vmatpush1.bf16.msra.mxu1 %v2737_v23 }
  0x51   :  { %894 = vmatprep.subr.bf16.mxu1 %v2741_v25 }
  0x54   :  { %895 = vmatpush1.bf16.msra.mxu1 %v2747_v26 }
  0x55   :  { %896 = vmatprep.subr.bf16.mxu1 %v2751_v5 }
  0x58   :  { %897 = vmatpush1.bf16.msra.mxu1 %v2754_v27 }
  0x59   :  { %898 = vmatprep.subr.bf16.mxu1 %v2757_v28 }
  0x5c   :  { %899 = vmatpush1.bf16.msra.mxu1 %v2760_v29 }
  0x5d   :  { %900 = vmatprep.subr.bf16.mxu1 %v2763_v30 }
  0x60   :  { %901 = vmatpush1.bf16.msra.mxu1 %v2766_v31 }
  0x61   :  { %902 = vmatprep.subr.bf16.mxu1 %v2769_v33 }
  0x64   :  { %903 = vmatpush1.bf16.msra.mxu1 %v2772_v35 }
  0x65   :  { %993 = vmatprep.subr.bf16.mxu1 %v2705_v15 }
  0x67   :  { %921 = vmatmul.mubr.bf16.vlgmr.msra.gmra.mxu1 %v3462_v16 }
  0x68   :  { %994 = vmatpush1.bf16.msra.mxu1 %v2714_v18  ;;  %1025 = vmatprep.mubr.bf16.mxu1 %v3462_v16 }
  0x69   :  { %995 = vmatprep.subr.bf16.mxu1 %v2717_v19 }
  0x6c   :  { %996 = vmatpush1.bf16.msra.mxu1 %v2725_v20 }
  0x6d   :  { %997 = vmatprep.subr.bf16.mxu1 %v2729_v21 }
  0x70   :  { %998 = vmatpush1.bf16.msra.mxu1 %v2737_v23 }
  0x71   :  { %999 = vmatprep.subr.bf16.mxu1 %v2741_v25 }
  0x74   :  { %1000 = vmatpush1.bf16.msra.mxu1 %v2747_v26 }
  0x75   :  { %1001 = vmatprep.subr.bf16.mxu1 %v2751_v5 }
  0x78   :  { %1002 = vmatpush1.bf16.msra.mxu1 %v2754_v27 }
  0x79   :  { %1003 = vmatprep.subr.bf16.mxu1 %v2757_v28 }
  0x7c   :  { %1004 = vmatpush1.bf16.msra.mxu1 %v2760_v29 }
  0x7d   :  { %1005 = vmatprep.subr.bf16.mxu1 %v2763_v30 }
  0x80   :  { %1006 = vmatpush1.bf16.msra.mxu1 %v2766_v31 }
  0x81   :  { %1007 = vmatprep.subr.bf16.mxu1 %v2769_v33 }
  0x84   :  { %1008 = vmatpush1.bf16.msra.mxu1 %v2772_v35 }
  0x85   :  { %1098 = vmatprep.subr.bf16.mxu1 %v2705_v15 }
  0xe7   :  { %v2799_v38 = vpop.f32.mrf.mxu1  ;;  %v495_v52 = vpop.f32.mrf.mxu0 }
  0xe9   :  { %v2802_v40 = vpop.f32.mrf.mxu1  ;;  %v497_v56 = vpop.f32.mrf.mxu0 }
  0xeb   :  { %v614_v42 = vpop.f32.mrf.mxu1  ;;  %v2827_v62 = vpop.f32.mrf.mxu0 }
  0xec   :  { %v2809_v44 = vadd.f32 %v614_v42, %v2804_v41  ;;  %v2840_v42 = vrot.slane %v382_v37, %v390_v0 }
  0xed   :  { %v616_v45 = vpop.f32.mrf.mxu1  ;;  %v2833_v2 = vpop.f32.mrf.mxu0 }
  0xee   :  { %v2812_v46 = vadd.f32 %v616_v45, %v2806_v43 }
  0xef   :  { %v620_v48 = vpop.f32.mrf.mxu1  ;;  %v507_v36 = vpop.f32.mrf.mxu0 }
  0xf0   :  { %v2815_v49 = vadd.f32 %v620_v48, %v2804_v41  ;;  %v2843_v45 = vadd.f32 %v507_v36, %v2835_v12 }
  0xf1   :  { %v622_v50 = vpop.f32.mrf.mxu1  ;;  %v509_v48 = vpop.f32.mrf.mxu0 }
  0xf2   :  { %v2818_v51 = vadd.f32 %v622_v50, %v2806_v43 }
  0xf3   :  { %v626_v53 = vpop.f32.mrf.mxu1  ;;  %v513_v58 = vpop.f32.mrf.mxu0 }
  0xf4   :  { %v2821_v55 = vadd.f32 %v626_v53, %v2804_v41  ;;  %v2849_v53 = vadd.f32 %v509_v48, %v2840_v42 }
  0xf5   :  { %v628_v57 = vpop.f32.mrf.mxu1  ;;  %v515_v0 = vpop.f32.mrf.mxu0 }
  0xf6   :  { %3464 = vst [vmem:[#allocation8_spill] sm:$0xff] %v2821_v55  ;;  %v2825_v59 = vadd.f32 %v628_v57, %v2806_v43 }
  0xf7   :  { %v632_v63 = vpop.f32.mrf.mxu1  ;;  %v519_v48 = vpop.f32.mrf.mxu0 }
  0xf8   :  { %3465 = vst [vmem:[#allocation9_spill] sm:$0xff] %v2825_v59  ;;  %v2831_v1 = vadd.f32 %v632_v63, %v2804_v41 }
  0xf9   :  { %v634_v3 = vpop.f32.mrf.mxu1 }
  0xfa   :  { %3466 = vst [vmem:[#allocation10_spill] sm:$0xff] %v2831_v1  ;;  %v2838_v9 = vadd.f32 %v634_v3, %v2806_v43  ;;  %v2855_v3 = vadd.f32 %v513_v58, %v2835_v12  ;;  %v521_v58 = vpop.f32.mrf.mxu0 }
  0xfb   :  { %v638_v39 = vpop.f32.mrf.mxu1 }
  0xfc   :  { %3467 = vst [vmem:[#allocation11_spill] sm:$0xff] %v2838_v9  ;;  %v2846_v7 = vadd.f32 %v638_v39, %v2804_v41  ;;  %v2861_v39 = vadd.f32 %v515_v0, %v2840_v42  ;;  %v525_v0 = vpop.f32.mrf.mxu0 }
  0xfd   :  { %v640_v50 = vpop.f32.mrf.mxu1 }
  0xfe   :  { %3468 = vst [vmem:[#allocation12_spill] sm:$0xff] %v2846_v7  ;;  %v2852_v57 = vadd.f32 %v640_v50, %v2806_v43  ;;  %3471 = vst [vmem:[#allocation15_spill] sm:$0xff] %v2861_v39  ;;  %v2867_v50 = vadd.f32 %v519_v48, %v2835_v12 }
  0xff   :  { %v644_v63 = vpop.f32.mrf.mxu1 }
 0x100   :  { %3469 = vst [vmem:[#allocation13_spill] sm:$0xff] %v2852_v57  ;;  %v2858_v37 = vadd.f32 %v644_v63, %v2804_v41  ;;  %3473 = vst [vmem:[#allocation17_spill] sm:$0xff] %v2867_v50  ;;  %v2873_v63 = vadd.f32 %v521_v58, %v2840_v42 }
 0x101   :  { %v646_v36 = vpop.f32.mrf.mxu1 }
 0x102   :  { %3470 = vst [vmem:[#allocation14_spill] sm:$0xff] %v2858_v37  ;;  %v2864_v16 = vadd.f32 %v646_v36, %v2806_v43  ;;  %3475 = vst [vmem:[#allocation19_spill] sm:$0xff] %v2873_v63  ;;  %v2879_v36 = vadd.f32 %v525_v0, %v2835_v12  ;;  %v498_v0 = vadd.f32 %v497_v56, %v2840_v42 }
 0x103   :  { %v650_v7 = vpop.f32.mrf.mxu1 }
 0x104   :  { %3472 = vst [vmem:[#allocation16_spill] sm:$0xff] %v2864_v16  ;;  %v2870_v57 = vadd.f32 %v650_v7, %v2804_v41  ;;  %3477 = vst [vmem:[#allocation21_spill] sm:$0xff] %v2879_v36  ;;  %v527_v16 = vpop.f32.mrf.mxu0  ;;  %v496_v36 = vadd.f32 %v495_v52, %v2835_v12 }
 0x105   :  { %v652_v9 = vpop.f32.mrf.mxu1  ;;  %v2882_v48 = vadd.f32 %v527_v16, %v2840_v42 }
 0x106   :  { %3474 = vst [vmem:[#allocation18_spill] sm:$0xff] %v2870_v57  ;;  %v2876_v37 = vadd.f32 %v652_v9, %v2806_v43  ;;  %v531_v7 = vpop.f32.mrf.mxu0 }
 0x107   :  { %v881_v1 = vpop.f32.mrf.mxu1  ;;  %3478 = vst [vmem:[#allocation22_spill] sm:$0xff] %v2882_v48  ;;  %v2885_v50 = vadd.f32 %v531_v7, %v2835_v12 }
 0x108   :  { %3476 = vst [vmem:[#allocation20_spill] sm:$0xff] %v2876_v37  ;;  %v533_v58 = vpop.f32.mrf.mxu0  ;;  %v929_v48 = vadd.f32 %v881_v1, %v496_v36 }
 0x109   :  { %v883_v59 = vpop.f32.mrf.mxu1  ;;  %3479 = vst [vmem:[#allocation23_spill] sm:$0xff] %v2885_v50  ;;  %v2888_v9 = vadd.f32 %v533_v58, %v2840_v42 }
 0x10a   :  { %v537_v37 = vpop.f32.mrf.mxu0  ;;  %v930_v16 = vadd.f32 %v883_v59, %v498_v0 }
 0x10b   :  { %v885_v57 = vpop.f32.mrf.mxu1  ;;  %3480 = vst [vmem:[#allocation24_spill] sm:$0xff] %v2888_v9  ;;  %v2891_v55 = vadd.f32 %v537_v37, %v2835_v12  ;;  %v611_v37 = vadd.f32 %v2802_v40, %v2806_v43 }
 0x10c   :  { %v937_v39 = vmul.f32 0.5, %v930_v16  ;;  %v933_v57 = vmul.f32 0.5, %v929_v48 }
 0x10d   :  { %v886_v63 = vpop.f32.mrf.mxu1  ;;  %3481 = vst [vmem:[#allocation25_spill] sm:$0xff] %v2891_v55 }
 0x10e   :  { %2254 = vtanh.f32 %v937_v39  ;;  %v609_v63 = vadd.f32 %v2799_v38, %v2804_v41 }
 0x10f   :  { %2256 = vtanh.f32 %v933_v57 }
 0x11b   :  { %v2255_v50 = vpop.eup %2254 }
 0x11c   :  { %v2257_v59 = vpop.eup %2256  ;;  %v939_v1 = vmul.f32 0.5, %v2255_v50 }
 0x11d   :  { %v935_v48 = vmul.f32 0.5, %v2257_v59  ;;  %v504_v59 = vadd.f32 %v2833_v2, %v2840_v42 }
 0x11e   :  { %v940_v39 = vadd.f32 0.5, %v939_v1 }
 0x11f   :  { %v936_v0 = vadd.f32 0.5, %v935_v48 }
 0x120   :  { %v946_v38 = vmul.f32 0.0, %v940_v39 }
 0x127   :  { %v922_v7 = vpop.f32.mrf.mxu1 }
 0x128   :  { %v931_v58 = vadd.f32 %v922_v7, %v609_v63  ;;  %v3482_v7 = vmov 0  }
 0x129   :  { %v924_v9 = vpop.f32.mrf.mxu1 }
 0x12a   :  { %2258 = vtanh.f32 %v931_v58  ;;  %v932_v56 = vadd.f32 %v924_v9, %v611_v37  ;;  %v2940_v58 = vpop.f32.mrf.mxu0  ;;  %v502_v37 = vadd.f32 %v2827_v62, %v2835_v12 }
 0x12b   :  { %v926_v55 = vpop.f32.mrf.mxu1 }
 0x12c   :  { %v942_v36 = vmul.f32 0.5, %v932_v56 }
 0x12d   :  { %v927_v52 = vpop.f32.mrf.mxu1 }
 0x12e   :  { %2260 = vtanh.f32 %v942_v36 }
 0x137   :  { %v2259_v16 = vpop.eup %2258 }
 0x138   :  { %v947_v41 = vmul.f32 %v2259_v16, %v936_v0 }
 0x13a   :  { %v2899_v57 = vadd.f32 %v947_v41, %v946_v38 }
 0x13b   :  { %v2261_v40 = vpop.eup %2260 }
 0x13c   :  { %2262 = vtanh.f32 %v2899_v57  ;;  %v944_v43 = vmul.f32 0.5, %v2261_v40 }
 0x13e   :  { %v945_v55 = vadd.f32 0.5, %v944_v43 }
 0x149   :  { %v2263_v9 = vpop.eup %2262 }
 0x14a   :  { %v2902_v63 = vmul.f32 %v2263_v9, %v945_v55 }
 0x14c   :  { %v951_v50 = vpack.c.bf16 %v2902_v63, %v2902_v63 }
 0x14e   :  { %985 = vmatmul.mubr.bf16.vlgmr.msra.gmra.mxu0 %v951_v50  ;;  %1026 = vmatmul.mubr.bf16.vlgmr.msra.gmra.mxu1 %v951_v50 }
 0x14f   :  { %1058 = vmatpush1.bf16.msra.mxu0 %v2537_v11  ;;  %1099 = vmatpush1.bf16.msra.mxu1 %v2714_v18 }
 0x150   :  { %1059 = vmatprep.subr.bf16.mxu0 %v2548_v17  ;;  %1100 = vmatprep.subr.bf16.mxu1 %v2717_v19 }
 0x151   :  { %1089 = vmatprep.mubr.bf16.mxu0 %v3482_v7  ;;  %1130 = vmatprep.mubr.bf16.mxu1 %v3482_v7 }
 0x153   :  { %1060 = vmatpush1.bf16.msra.mxu0 %v2555_v22  ;;  %1101 = vmatpush1.bf16.msra.mxu1 %v2725_v20 }
 0x154   :  { %1061 = vmatprep.subr.bf16.mxu0 %v2559_v24  ;;  %1102 = vmatprep.subr.bf16.mxu1 %v2729_v21 }
 0x157   :  { %1062 = vmatpush1.bf16.msra.mxu0 %v2580_v32  ;;  %1103 = vmatpush1.bf16.msra.mxu1 %v2737_v23 }
 0x158   :  { %1063 = vmatprep.subr.bf16.mxu0 %v2588_v34  ;;  %1104 = vmatprep.subr.bf16.mxu1 %v2741_v25 }
 0x15b   :  { %1064 = vmatpush1.bf16.msra.mxu0 %v2622_v47  ;;  %1105 = vmatpush1.bf16.msra.mxu1 %v2747_v26 }
 0x15c   :  { %1065 = vmatprep.subr.bf16.mxu0 %v2639_v54  ;;  %1106 = vmatprep.subr.bf16.mxu1 %v2751_v5 }
 0x15f   :  { %1066 = vmatpush1.bf16.msra.mxu0 %v2654_v60  ;;  %1107 = vmatpush1.bf16.msra.mxu1 %v2754_v27 }
 0x160   :  { %1067 = vmatprep.subr.bf16.mxu0 %v2657_v61  ;;  %1108 = vmatprep.subr.bf16.mxu1 %v2757_v28 }
 0x163   :  { %1068 = vmatpush1.bf16.msra.mxu0 %v2672_v4  ;;  %1109 = vmatpush1.bf16.msra.mxu1 %v2760_v29 }
 0x164   :  { %1069 = vmatprep.subr.bf16.mxu0 %v2677_v8  ;;  %1110 = vmatprep.subr.bf16.mxu1 %v2763_v30 }
 0x167   :  { %1070 = vmatpush1.bf16.msra.mxu0 %v2680_v10  ;;  %1111 = vmatpush1.bf16.msra.mxu1 %v2766_v31 }
 0x168   :  { %1071 = vmatprep.subr.bf16.mxu0 %v2687_v13  ;;  %1112 = vmatprep.subr.bf16.mxu1 %v2769_v33 }
 0x16b   :  { %1072 = vmatpush1.bf16.msra.mxu0 %v2695_v14  ;;  %1113 = vmatpush1.bf16.msra.mxu1 %v2772_v35 }
 0x16c   :  { %1162 = vmatprep.subr.bf16.mxu0 %v2526_v6  ;;  %1203 = vmatprep.subr.bf16.mxu1 %v2705_v15 }
 0x20e   :  { %v986_v56 = vpop.f32.mrf.mxu0  ;;  %v1027_v52 = vpop.f32.mrf.mxu1 }
 0x20f   :  { %v1034_v1 = vadd.f32 %v986_v56, %v502_v37  ;;  %v1036_v41 = vadd.f32 %v1027_v52, %v2809_v44 }
 0x210   :  { %v988_v36 = vpop.f32.mrf.mxu0  ;;  %v1029_v48 = vpop.f32.mrf.mxu1 }
 0x211   :  { %v1038_v39 = vmul.f32 0.5, %v1034_v1  ;;  %v1035_v0 = vadd.f32 %v988_v36, %v504_v59  ;;  %v1037_v62 = vadd.f32 %v1029_v48, %v2812_v46 }
 0x212   :  { %v990_v16 = vpop.f32.mrf.mxu0  ;;  %v1031_v38 = vpop.f32.mrf.mxu1 }
 0x213   :  { %2264 = vtanh.f32 %v1038_v39  ;;  %v1042_v40 = vmul.f32 0.5, %v1035_v0  ;;  %v1047_v12 = vmul.f32 0.5, %v1037_v62 }
 0x214   :  { %v991_v43 = vpop.f32.mrf.mxu0  ;;  %v1032_v55 = vpop.f32.mrf.mxu1 }
 0x215   :  { %2266 = vtanh.f32 %v1042_v40 }
 0x216   :  { %2268 = vtanh.f32 %v1036_v41 }
 0x217   :  { %2270 = vtanh.f32 %v1047_v12 }
 0x220   :  { %v2265_v9 = vpop.eup %2264 }
 0x221   :  { %v1040_v2 = vmul.f32 0.5, %v2265_v9 }
 0x222   :  { %v2267_v50 = vpop.eup %2266 }
 0x223   :  { %v1041_v37 = vadd.f32 0.5, %v1040_v2  ;;  %v1044_v56 = vmul.f32 0.5, %v2267_v50  ;;  %v2269_v59 = vpop.eup %2268 }
 0x224   :  { %v2271_v52 = vpop.eup %2270 }
 0x225   :  { %v1045_v1 = vadd.f32 0.5, %v1044_v56  ;;  %v1052_v36 = vmul.f32 %v2269_v59, %v1041_v37  ;;  %v1049_v0 = vmul.f32 0.5, %v2271_v52 }
 0x227   :  { %v1051_v39 = vmul.f32 %v1045_v1, %v2899_v57  ;;  %v1050_v16 = vadd.f32 0.5, %v1049_v0 }
 0x229   :  { %v2949_v44 = vadd.f32 %v1052_v36, %v1051_v39 }
 0x22b   :  { %2272 = vtanh.f32 %v2949_v44 }
 0x238   :  { %v2273_v46 = vpop.eup %2272 }
 0x239   :  { %v2952_v48 = vmul.f32 %v2273_v46, %v1050_v16 }
 0x23b   :  { %v1056_v38 = vpack.c.bf16 %v2952_v48, %v2952_v48 }
 0x23d   :  { %1090 = vmatmul.mubr.bf16.vlgmr.msra.gmra.mxu0 %v1056_v38  ;;  %1131 = vmatmul.mubr.bf16.vlgmr.msra.gmra.mxu1 %v1056_v38 }
 0x23e   :  { %1163 = vmatpush1.bf16.msra.mxu0 %v2537_v11  ;;  %1204 = vmatpush1.bf16.msra.mxu1 %v2714_v18 }
 0x23f   :  { %1164 = vmatprep.subr.bf16.mxu0 %v2548_v17  ;;  %1205 = vmatprep.subr.bf16.mxu1 %v2717_v19 }
 0x240   :  { %1194 = vmatprep.mubr.bf16.mxu0 %v3482_v7  ;;  %1235 = vmatprep.mubr.bf16.mxu1 %v3482_v7 }
 0x242   :  { %1165 = vmatpush1.bf16.msra.mxu0 %v2555_v22  ;;  %1206 = vmatpush1.bf16.msra.mxu1 %v2725_v20 }
 0x243   :  { %1166 = vmatprep.subr.bf16.mxu0 %v2559_v24  ;;  %1207 = vmatprep.subr.bf16.mxu1 %v2729_v21 }
 0x246   :  { %1167 = vmatpush1.bf16.msra.mxu0 %v2580_v32  ;;  %1208 = vmatpush1.bf16.msra.mxu1 %v2737_v23 }
 0x247   :  { %1168 = vmatprep.subr.bf16.mxu0 %v2588_v34  ;;  %1209 = vmatprep.subr.bf16.mxu1 %v2741_v25 }
 0x24a   :  { %1169 = vmatpush1.bf16.msra.mxu0 %v2622_v47  ;;  %1210 = vmatpush1.bf16.msra.mxu1 %v2747_v26 }
 0x24b   :  { %1170 = vmatprep.subr.bf16.mxu0 %v2639_v54  ;;  %1211 = vmatprep.subr.bf16.mxu1 %v2751_v5 }
 0x24e   :  { %1171 = vmatpush1.bf16.msra.mxu0 %v2654_v60  ;;  %1212 = vmatpush1.bf16.msra.mxu1 %v2754_v27 }
 0x24f   :  { %1172 = vmatprep.subr.bf16.mxu0 %v2657_v61  ;;  %1213 = vmatprep.subr.bf16.mxu1 %v2757_v28 }
 0x252   :  { %1173 = vmatpush1.bf16.msra.mxu0 %v2672_v4  ;;  %1214 = vmatpush1.bf16.msra.mxu1 %v2760_v29 }
 0x253   :  { %1174 = vmatprep.subr.bf16.mxu0 %v2677_v8  ;;  %1215 = vmatprep.subr.bf16.mxu1 %v2763_v30 }
 0x256   :  { %1175 = vmatpush1.bf16.msra.mxu0 %v2680_v10  ;;  %1216 = vmatpush1.bf16.msra.mxu1 %v2766_v31 }
 0x257   :  { %1176 = vmatprep.subr.bf16.mxu0 %v2687_v13  ;;  %1217 = vmatprep.subr.bf16.mxu1 %v2769_v33 }
 0x25a   :  { %1177 = vmatpush1.bf16.msra.mxu0 %v2695_v14  ;;  %1218 = vmatpush1.bf16.msra.mxu1 %v2772_v35 }
 0x25b   :  { %1267 = vmatprep.subr.bf16.mxu0 %v2526_v6  ;;  %1308 = vmatprep.subr.bf16.mxu1 %v2705_v15 }
 0x2fd   :  { %v1091_v11 = vpop.f32.mrf.mxu0  ;;  %v1132_v57 = vpop.f32.mrf.mxu1 }
 0x2fe   :  { %v1139_v41 = vadd.f32 %v1091_v11, %v2843_v45  ;;  %v1141_v2 = vadd.f32 %v1132_v57, %v2815_v49 }
 0x2ff   :  { %v1093_v40 = vpop.f32.mrf.mxu0  ;;  %v1134_v43 = vpop.f32.mrf.mxu1 }
 0x300   :  { %v1143_v55 = vmul.f32 0.5, %v1139_v41  ;;  %v1140_v62 = vadd.f32 %v1093_v40, %v2849_v53  ;;  %v1142_v6 = vadd.f32 %v1134_v43, %v2818_v51  ;;  %v3002_v43 = vld [vmem:[#allocation5 + $0xe0] ss:$16 sps:$4 sm:$0xff]  }
 0x301   :  { %v1095_v12 = vpop.f32.mrf.mxu0  ;;  %v1136_v9 = vpop.f32.mrf.mxu1 }
 0x302   :  { %2274 = vtanh.f32 %v1143_v55  ;;  %v1147_v50 = vmul.f32 0.5, %v1140_v62  ;;  %v1152_v59 = vmul.f32 0.5, %v1142_v6  ;;  %v3483_v55 = vld [vmem:[#allocation15_spill] sm:$0xff] }
 0x303   :  { %v1096_v37 = vpop.f32.mrf.mxu0  ;;  %v1137_v56 = vpop.f32.mrf.mxu1 }
 0x304   :  { %2276 = vtanh.f32 %v1147_v50 }
 0x305   :  { %2278 = vtanh.f32 %v1141_v2  ;;  %v3484_v2 = vld [vmem:[#allocation8_spill] sm:$0xff] }
 0x306   :  { %2280 = vtanh.f32 %v1152_v59  ;;  %v3485_v59 = vld [vmem:[#allocation9_spill] sm:$0xff] }
 0x30f   :  { %v2275_v1 = vpop.eup %2274 }
 0x310   :  { %v1145_v45 = vmul.f32 0.5, %v2275_v1 }
 0x311   :  { %v2277_v36 = vpop.eup %2276 }
 0x312   :  { %v1146_v39 = vadd.f32 0.5, %v1145_v45  ;;  %v1149_v52 = vmul.f32 0.5, %v2277_v36  ;;  %v2279_v53 = vpop.eup %2278 }
 0x313   :  { %v2281_v38 = vpop.eup %2280 }
 0x314   :  { %v1150_v0 = vadd.f32 0.5, %v1149_v52  ;;  %v1157_v16 = vmul.f32 %v2279_v53, %v1146_v39  ;;  %v1154_v11 = vmul.f32 0.5, %v2281_v38 }
 0x316   :  { %v1156_v46 = vmul.f32 %v1150_v0, %v2949_v44  ;;  %v1155_v57 = vadd.f32 0.5, %v1154_v11 }
 0x318   :  { %v2995_v49 = vadd.f32 %v1157_v16, %v1156_v46 }
 0x31a   :  { %2282 = vtanh.f32 %v2995_v49 }
 0x327   :  { %v2283_v51 = vpop.eup %2282 }
 0x328   :  { %v2998_v41 = vmul.f32 %v2283_v51, %v1155_v57 }
 0x32a   :  { %v1161_v40 = vpack.c.bf16 %v2998_v41, %v2998_v41 }
 0x32c   :  { %1195 = vmatmul.mubr.bf16.vlgmr.msra.gmra.mxu0 %v1161_v40  ;;  %1236 = vmatmul.mubr.bf16.vlgmr.msra.gmra.mxu1 %v1161_v40 }
 0x32d   :  { %1268 = vmatpush1.bf16.msra.mxu0 %v3002_v43  ;;  %1309 = vmatpush1.bf16.msra.mxu1 %v2714_v18 }
 0x32e   :  { %1269 = vmatprep.subr.bf16.mxu0 %v2548_v17  ;;  %1310 = vmatprep.subr.bf16.mxu1 %v2717_v19  ;;  %v3036_v17 = vld [vmem:[#allocation5 + $0xe4] ss:$16 sps:$4 sm:$0xff]  }
 0x32f   :  { %1299 = vmatprep.mubr.bf16.mxu0 %v3482_v7  ;;  %1340 = vmatprep.mubr.bf16.mxu1 %v3482_v7 }
 0x331   :  { %1270 = vmatpush1.bf16.msra.mxu0 %v2555_v22  ;;  %1311 = vmatpush1.bf16.msra.mxu1 %v2725_v20 }
 0x332   :  { %1271 = vmatprep.subr.bf16.mxu0 %v2559_v24  ;;  %1312 = vmatprep.subr.bf16.mxu1 %v2729_v21 }
 0x335   :  { %1272 = vmatpush1.bf16.msra.mxu0 %v2580_v32  ;;  %1313 = vmatpush1.bf16.msra.mxu1 %v2737_v23 }
 0x336   :  { %1273 = vmatprep.subr.bf16.mxu0 %v2588_v34  ;;  %1314 = vmatprep.subr.bf16.mxu1 %v2741_v25 }
 0x339   :  { %1274 = vmatpush1.bf16.msra.mxu0 %v2622_v47  ;;  %1315 = vmatpush1.bf16.msra.mxu1 %v2747_v26 }
 0x33a   :  { %1275 = vmatprep.subr.bf16.mxu0 %v2639_v54  ;;  %1316 = vmatprep.subr.bf16.mxu1 %v2751_v5 }
 0x33d   :  { %1276 = vmatpush1.bf16.msra.mxu0 %v2654_v60  ;;  %1317 = vmatpush1.bf16.msra.mxu1 %v2754_v27 }
 0x33e   :  { %1277 = vmatprep.subr.bf16.mxu0 %v2657_v61  ;;  %1318 = vmatprep.subr.bf16.mxu1 %v2757_v28 }
 0x341   :  { %1278 = vmatpush1.bf16.msra.mxu0 %v2672_v4  ;;  %1319 = vmatpush1.bf16.msra.mxu1 %v2760_v29 }
 0x342   :  { %1279 = vmatprep.subr.bf16.mxu0 %v2677_v8  ;;  %1320 = vmatprep.subr.bf16.mxu1 %v2763_v30 }
 0x345   :  { %1280 = vmatpush1.bf16.msra.mxu0 %v2680_v10  ;;  %1321 = vmatpush1.bf16.msra.mxu1 %v2766_v31 }
 0x346   :  { %1281 = vmatprep.subr.bf16.mxu0 %v2687_v13  ;;  %1322 = vmatprep.subr.bf16.mxu1 %v2769_v33 }
 0x349   :  { %1282 = vmatpush1.bf16.msra.mxu0 %v2695_v14  ;;  %1323 = vmatpush1.bf16.msra.mxu1 %v2772_v35 }
 0x34a   :  { %1372 = vmatprep.subr.bf16.mxu0 %v3036_v17  ;;  %1413 = vmatprep.subr.bf16.mxu1 %v2705_v15 }
 0x3ec   :  { %v1196_v22 = vpop.f32.mrf.mxu0  ;;  %v1237_v24 = vpop.f32.mrf.mxu1 }
 0x3ed   :  { %v1244_v32 = vadd.f32 %v1196_v22, %v2855_v3  ;;  %v1246_v50 = vadd.f32 %v1237_v24, %v3484_v2 }
 0x3ee   :  { %v1198_v34 = vpop.f32.mrf.mxu0  ;;  %v1239_v47 = vpop.f32.mrf.mxu1 }
 0x3ef   :  { %v1248_v44 = vmul.f32 0.5, %v1244_v32  ;;  %v1245_v62 = vadd.f32 %v1198_v34, %v3483_v55  ;;  %v1247_v1 = vadd.f32 %v1239_v47, %v3485_v59  ;;  %v3060_v34 = vld [vmem:[#allocation5 + $0xc0] ss:$16 sps:$4 sm:$0xff]   ;;  %v3064_v47 = vld [vmem:[#allocation5 + $0xa4] ss:$16 sps:$4 sm:$0xff]  }
 0x3f0   :  { %v1200_v12 = vpop.f32.mrf.mxu0  ;;  %v1241_v9 = vpop.f32.mrf.mxu1  ;;  %v3072_v55 = vld [vmem:[#allocation5 + $0x84] ss:$16 sps:$4 sm:$0xff]  }
 0x3f1   :  { %2284 = vtanh.f32 %v1248_v44  ;;  %v1252_v37 = vmul.f32 0.5, %v1245_v62  ;;  %v1257_v45 = vmul.f32 0.5, %v1247_v1  ;;  %v3068_v44 = vld [vmem:[#allocation5 + $0xa0] ss:$16 sps:$4 sm:$0xff]   ;;  %v3487_v9 = vld [vmem:[#allocation19_spill] sm:$0xff] }
 0x3f2   :  { %v1201_v56 = vpop.f32.mrf.mxu0  ;;  %v1242_v6 = vpop.f32.mrf.mxu1  ;;  %v3076_v62 = vld [vmem:[#allocation5 + $0x80] ss:$16 sps:$4 sm:$0xff]   ;;  %v3489_v1 = vld [vmem:[#allocation11_spill] sm:$0xff] }
 0x3f3   :  { %2286 = vtanh.f32 %v1252_v37  ;;  %v3488_v37 = vld [vmem:[#allocation10_spill] sm:$0xff] }
 0x3f4   :  { %2288 = vtanh.f32 %v1246_v50 }
 0x3f5   :  { %2290 = vtanh.f32 %v1257_v45 }
 0x3fe   :  { %v2285_v36 = vpop.eup %2284 }
 0x3ff   :  { %v1250_v3 = vmul.f32 0.5, %v2285_v36 }
 0x400   :  { %v2287_v39 = vpop.eup %2286 }
 0x401   :  { %v1251_v52 = vadd.f32 0.5, %v1250_v3  ;;  %v1254_v53 = vmul.f32 0.5, %v2287_v39  ;;  %v2289_v0 = vpop.eup %2288 }
 0x402   :  { %v2291_v57 = vpop.eup %2290 }
 0x403   :  { %v1255_v16 = vadd.f32 0.5, %v1254_v53  ;;  %v1262_v46 = vmul.f32 %v2289_v0, %v1251_v52  ;;  %v1259_v51 = vmul.f32 0.5, %v2291_v57 }
 0x405   :  { %v1261_v38 = vmul.f32 %v1255_v16, %v2995_v49  ;;  %v1260_v40 = vadd.f32 0.5, %v1259_v51  ;;  %v3054_v49 = vld [vmem:[#allocation5 + $0xc4] ss:$16 sps:$4 sm:$0xff]  }
 0x407   :  { %v3045_v11 = vadd.f32 %v1262_v46, %v1261_v38 }
 0x409   :  { %2292 = vtanh.f32 %v3045_v11 }
 0x416   :  { %v2293_v22 = vpop.eup %2292 }
 0x417   :  { %v3048_v24 = vmul.f32 %v2293_v22, %v1260_v40 }
 0x419   :  { %v1266_v32 = vpack.c.bf16 %v3048_v24, %v3048_v24 }
 0x41b   :  { %1300 = vmatmul.mubr.bf16.vlgmr.msra.gmra.mxu0 %v1266_v32  ;;  %1341 = vmatmul.mubr.bf16.vlgmr.msra.gmra.mxu1 %v1266_v32 }
 0x41c   :  { %1373 = vmatpush1.bf16.msra.mxu0 %v3002_v43  ;;  %1414 = vmatpush1.bf16.msra.mxu1 %v2714_v18 }
 0x41d   :  { %1374 = vmatprep.subr.bf16.mxu0 %v3054_v49  ;;  %1415 = vmatprep.subr.bf16.mxu1 %v2717_v19 }
 0x41e   :  { %1404 = vmatprep.mubr.bf16.mxu0 %v3482_v7  ;;  %1445 = vmatprep.mubr.bf16.mxu1 %v3482_v7 }
 0x420   :  { %1375 = vmatpush1.bf16.msra.mxu0 %v3060_v34  ;;  %1416 = vmatpush1.bf16.msra.mxu1 %v2725_v20 }
 0x421   :  { %1376 = vmatprep.subr.bf16.mxu0 %v3064_v47  ;;  %1417 = vmatprep.subr.bf16.mxu1 %v2729_v21 }
 0x424   :  { %1377 = vmatpush1.bf16.msra.mxu0 %v3068_v44  ;;  %1418 = vmatpush1.bf16.msra.mxu1 %v2737_v23 }
 0x425   :  { %1378 = vmatprep.subr.bf16.mxu0 %v3072_v55  ;;  %1419 = vmatprep.subr.bf16.mxu1 %v2741_v25 }
 0x428   :  { %1379 = vmatpush1.bf16.msra.mxu0 %v3076_v62  ;;  %1420 = vmatpush1.bf16.msra.mxu1 %v2747_v26 }
 0x429   :  { %1380 = vmatprep.subr.bf16.mxu0 %v2639_v54  ;;  %1421 = vmatprep.subr.bf16.mxu1 %v2751_v5 }
 0x42c   :  { %1381 = vmatpush1.bf16.msra.mxu0 %v2654_v60  ;;  %1422 = vmatpush1.bf16.msra.mxu1 %v2754_v27 }
 0x42d   :  { %1382 = vmatprep.subr.bf16.mxu0 %v2657_v61  ;;  %1423 = vmatprep.subr.bf16.mxu1 %v2757_v28  ;;  %v3486_v61 = vld [vmem:[#allocation17_spill] sm:$0xff] }
 0x430   :  { %1383 = vmatpush1.bf16.msra.mxu0 %v2672_v4  ;;  %1424 = vmatpush1.bf16.msra.mxu1 %v2760_v29 }
 0x431   :  { %1384 = vmatprep.subr.bf16.mxu0 %v2677_v8  ;;  %1425 = vmatprep.subr.bf16.mxu1 %v2763_v30 }
 0x434   :  { %1385 = vmatpush1.bf16.msra.mxu0 %v2680_v10  ;;  %1426 = vmatpush1.bf16.msra.mxu1 %v2766_v31 }
 0x435   :  { %1386 = vmatprep.subr.bf16.mxu0 %v2687_v13  ;;  %1427 = vmatprep.subr.bf16.mxu1 %v2769_v33 }
 0x438   :  { %1387 = vmatpush1.bf16.msra.mxu0 %v2695_v14  ;;  %1428 = vmatpush1.bf16.msra.mxu1 %v2772_v35 }
 0x439   :  { %1477 = vmatprep.subr.bf16.mxu0 %v3036_v17  ;;  %1518 = vmatprep.subr.bf16.mxu1 %v2705_v15 }
 0x4db   :  { %v1301_v54 = vpop.f32.mrf.mxu0  ;;  %v1342_v60 = vpop.f32.mrf.mxu1 }
 0x4dc   :  { %v1349_v4 = vadd.f32 %v1301_v54, %v3486_v61  ;;  %v1351_v14 = vadd.f32 %v1342_v60, %v3488_v37 }
 0x4dd   :  { %v1303_v8 = vpop.f32.mrf.mxu0  ;;  %v1344_v10 = vpop.f32.mrf.mxu1 }
 0x4de   :  { %v1353_v12 = vmul.f32 0.5, %v1349_v4  ;;  %v1350_v2 = vadd.f32 %v1303_v8, %v3487_v9  ;;  %v1352_v45 = vadd.f32 %v1344_v10, %v3489_v1  ;;  %v3491_v8 = vld [vmem:[#allocation22_spill] sm:$0xff]  ;;  %v3492_v9 = vld [vmem:[#allocation12_spill] sm:$0xff] }
 0x4df   :  { %v1305_v13 = vpop.f32.mrf.mxu0  ;;  %v1346_v50 = vpop.f32.mrf.mxu1 }
 0x4e0   :  { %2294 = vtanh.f32 %v1353_v12  ;;  %v1357_v56 = vmul.f32 0.5, %v1350_v2  ;;  %v1362_v36 = vmul.f32 0.5, %v1352_v45 }
 0x4e1   :  { %v1306_v6 = vpop.f32.mrf.mxu0  ;;  %v1347_v59 = vpop.f32.mrf.mxu1 }
 0x4e2   :  { %2296 = vtanh.f32 %v1357_v56 }
 0x4e3   :  { %2298 = vtanh.f32 %v1351_v14 }
 0x4e4   :  { %2300 = vtanh.f32 %v1362_v36 }
 0x4ed   :  { %v2295_v3 = vpop.eup %2294 }
 0x4ee   :  { %v1355_v39 = vmul.f32 0.5, %v2295_v3 }
 0x4ef   :  { %v2297_v52 = vpop.eup %2296 }
 0x4f0   :  { %v1356_v53 = vadd.f32 0.5, %v1355_v39  ;;  %v1359_v0 = vmul.f32 0.5, %v2297_v52  ;;  %v2299_v16 = vpop.eup %2298 }
 0x4f1   :  { %v2301_v40 = vpop.eup %2300 }
 0x4f2   :  { %v1360_v46 = vadd.f32 0.5, %v1359_v0  ;;  %v1367_v38 = vmul.f32 %v2299_v16, %v1356_v53  ;;  %v1364_v22 = vmul.f32 0.5, %v2301_v40  ;;  %v2414_v40 = vld [vmem:[#allocation5 + $0xe8] ss:$16 sps:$4 sm:$0xff]  }
 0x4f4   :  { %v1366_v57 = vmul.f32 %v1360_v46, %v3045_v11  ;;  %v1365_v32 = vadd.f32 0.5, %v1364_v22  ;;  %v2416_v22 = vld [vmem:[#allocation5 + $0xc8] ss:$16 sps:$4 sm:$0xff]  }
 0x4f6   :  { %v3103_v51 = vadd.f32 %v1367_v38, %v1366_v57 }
 0x4f8   :  { %2302 = vtanh.f32 %v3103_v51 }
 0x505   :  { %v2303_v54 = vpop.eup %2302 }
 0x506   :  { %v3106_v60 = vmul.f32 %v2303_v54, %v1365_v32  ;;  %v2417_v32 = vld [vmem:[#allocation5 + $0xac] ss:$16 sps:$4 sm:$0xff]   ;;  %v2420_v54 = vld [vmem:[#allocation5 + $0x88] ss:$16 sps:$4 sm:$0xff]  }
 0x508   :  { %v1371_v61 = vpack.c.bf16 %v3106_v60, %v3106_v60 }
 0x50a   :  { %1405 = vmatmul.mubr.bf16.vlgmr.msra.gmra.mxu0 %v1371_v61  ;;  %1446 = vmatmul.mubr.bf16.vlgmr.msra.gmra.mxu1 %v1371_v61  ;;  %v2427_v61 = vld [vmem:[#allocation5 + $0xc] ss:$16 sps:$4 sm:$0xff]  }
 0x50b   :  { %1478 = vmatpush1.bf16.msra.mxu0 %v3002_v43  ;;  %1519 = vmatpush1.bf16.msra.mxu1 %v2714_v18  ;;  %v3126_v18 = vld [vmem:[#allocation5 + $0x64] ss:$16 sps:$4 sm:$0xff]  }
 0x50c   :  { %1479 = vmatprep.subr.bf16.mxu0 %v3054_v49  ;;  %1520 = vmatprep.subr.bf16.mxu1 %v2717_v19  ;;  %v3130_v19 = vld [vmem:[#allocation5 + $0x60] ss:$16 sps:$4 sm:$0xff]  }
 0x50d   :  { %1509 = vmatprep.mubr.bf16.mxu0 %v3482_v7  ;;  %1550 = vmatprep.mubr.bf16.mxu1 %v3482_v7 }
 0x50f   :  { %1480 = vmatpush1.bf16.msra.mxu0 %v3060_v34  ;;  %1521 = vmatpush1.bf16.msra.mxu1 %v2725_v20  ;;  %v3134_v20 = vld [vmem:[#allocation5 + $0x44] ss:$16 sps:$4 sm:$0xff]  }
 0x510   :  { %1481 = vmatprep.subr.bf16.mxu0 %v3064_v47  ;;  %1522 = vmatprep.subr.bf16.mxu1 %v2729_v21  ;;  %v3138_v21 = vld [vmem:[#allocation5 + $0x40] ss:$16 sps:$4 sm:$0xff]  }
 0x513   :  { %1482 = vmatpush1.bf16.msra.mxu0 %v3068_v44  ;;  %1523 = vmatpush1.bf16.msra.mxu1 %v2737_v23  ;;  %v3142_v23 = vld [vmem:[#allocation5 + $0x24] ss:$16 sps:$4 sm:$0xff]  }
 0x514   :  { %1483 = vmatprep.subr.bf16.mxu0 %v3072_v55  ;;  %1524 = vmatprep.subr.bf16.mxu1 %v2741_v25  ;;  %v3146_v25 = vld [vmem:[#allocation5 + $0x20] ss:$16 sps:$4 sm:$0xff]  }
 0x517   :  { %1484 = vmatpush1.bf16.msra.mxu0 %v3076_v62  ;;  %1525 = vmatpush1.bf16.msra.mxu1 %v2747_v26  ;;  %v3150_v26 = vld [vmem:[#allocation5 + $0x4] ss:$16 sps:$4 sm:$0xff]  }
 0x518   :  { %1485 = vmatprep.subr.bf16.mxu0 %v3126_v18  ;;  %1526 = vmatprep.subr.bf16.mxu1 %v2751_v5  ;;  %v3154_v5 = vld [vmem:[#allocation5] ss:$16 sps:$4 sm:$0xff]  }
 0x51b   :  { %1486 = vmatpush1.bf16.msra.mxu0 %v3130_v19  ;;  %1527 = vmatpush1.bf16.msra.mxu1 %v2754_v27 }
 0x51c   :  { %1487 = vmatprep.subr.bf16.mxu0 %v3134_v20  ;;  %1528 = vmatprep.subr.bf16.mxu1 %v2757_v28 }
 0x51f   :  { %1488 = vmatpush1.bf16.msra.mxu0 %v3138_v21  ;;  %1529 = vmatpush1.bf16.msra.mxu1 %v2760_v29  ;;  %v3490_v29 = vld [vmem:[#allocation21_spill] sm:$0xff] }
 0x520   :  { %1489 = vmatprep.subr.bf16.mxu0 %v3142_v23  ;;  %1530 = vmatprep.subr.bf16.mxu1 %v2763_v30 }
 0x523   :  { %1490 = vmatpush1.bf16.msra.mxu0 %v3146_v25  ;;  %1531 = vmatpush1.bf16.msra.mxu1 %v2766_v31 }
 0x524   :  { %1491 = vmatprep.subr.bf16.mxu0 %v3150_v26  ;;  %1532 = vmatprep.subr.bf16.mxu1 %v2769_v33 }
 0x527   :  { %1492 = vmatpush1.bf16.msra.mxu0 %v3154_v5  ;;  %1533 = vmatpush1.bf16.msra.mxu1 %v2772_v35 }
 0x528   :  { %1582 = vmatprep.subr.bf16.mxu0 %v3036_v17  ;;  %1623 = vmatprep.subr.bf16.mxu1 %v2705_v15  ;;  %v3493_v15 = vld [vmem:[#allocation13_spill] sm:$0xff] }
 0x5ca   :  { %v1406_v27 = vpop.f32.mrf.mxu0  ;;  %v1447_v28 = vpop.f32.mrf.mxu1 }
 0x5cb   :  { %v1454_v30 = vadd.f32 %v1406_v27, %v3490_v29  ;;  %v1456_v2 = vadd.f32 %v1447_v28, %v3492_v9 }
 0x5cc   :  { %v1408_v31 = vpop.f32.mrf.mxu0  ;;  %v1449_v11 = vpop.f32.mrf.mxu1 }
 0x5cd   :  { %v1458_v4 = vmul.f32 0.5, %v1454_v30  ;;  %v1455_v10 = vadd.f32 %v1408_v31, %v3491_v8  ;;  %v1457_v17 = vadd.f32 %v1449_v11, %v3493_v15  ;;  %v3495_v30 = vld [vmem:[#allocation24_spill] sm:$0xff] }
 0x5ce   :  { %v1410_v33 = vpop.f32.mrf.mxu0  ;;  %v1451_v12 = vpop.f32.mrf.mxu1 }
 0x5cf   :  { %2304 = vtanh.f32 %v1458_v4  ;;  %v1462_v13 = vmul.f32 0.5, %v1455_v10  ;;  %v1467_v37 = vmul.f32 0.5, %v1457_v17  ;;  %v3497_v12 = vld [vmem:[#allocation16_spill] sm:$0xff] }
 0x5d0   :  { %v1411_v35 = vpop.f32.mrf.mxu0  ;;  %v1452_v50 = vpop.f32.mrf.mxu1 }
 0x5d1   :  { %2306 = vtanh.f32 %v1462_v13 }
 0x5d2   :  { %2308 = vtanh.f32 %v1456_v2 }
 0x5d3   :  { %2310 = vtanh.f32 %v1467_v37 }
 0x5dc   :  { %v2305_v14 = vpop.eup %2304 }
 0x5dd   :  { %v1460_v56 = vmul.f32 0.5, %v2305_v14 }
 0x5de   :  { %v2307_v6 = vpop.eup %2306 }
 0x5df   :  { %v1461_v59 = vadd.f32 0.5, %v1460_v56  ;;  %v1464_v1 = vmul.f32 0.5, %v2307_v6  ;;  %v2309_v45 = vpop.eup %2308 }
 0x5e0   :  { %v2311_v53 = vpop.eup %2310 }
 0x5e1   :  { %v1465_v36 = vadd.f32 0.5, %v1464_v1  ;;  %v1472_v3 = vmul.f32 %v2309_v45, %v1461_v59  ;;  %v1469_v0 = vmul.f32 0.5, %v2311_v53 }
 0x5e3   :  { %v1471_v39 = vmul.f32 %v1465_v36, %v3103_v51  ;;  %v1470_v16 = vadd.f32 0.5, %v1469_v0  ;;  %v2415_v51 = vld [vmem:[#allocation5 + $0xcc] ss:$16 sps:$4 sm:$0xff]   ;;  %v2247_v0 = vld [vmem:[%s3459_s4 + $0x30] sm:$0xff]  }
 0x5e5   :  { %v3165_v52 = vadd.f32 %v1472_v3, %v1471_v39 }
 0x5e7   :  { %2312 = vtanh.f32 %v3165_v52 }
 0x5f4   :  { %v2313_v46 = vpop.eup %2312 }
 0x5f5   :  { %v3168_v38 = vmul.f32 %v2313_v46, %v1470_v16  ;;  %v2248_v16 = vld [vmem:[%s3459_s4 + $0x28] sm:$0xff]   ;;  %v2249_v46 = vld [vmem:[%s3459_s4 + $0x20] sm:$0xff]  }
 0x5f7   :  { %v1476_v57 = vpack.c.bf16 %v3168_v38, %v3168_v38 }
 0x5f9   :  { %1510 = vmatmul.mubr.bf16.vlgmr.msra.gmra.mxu0 %v1476_v57  ;;  %1551 = vmatmul.mubr.bf16.vlgmr.msra.gmra.mxu1 %v1476_v57  ;;  %v2252_v57 = vld [vmem:[%s3459_s4 + $0x8] sm:$0xff]  }
 0x5fa   :  { %1583 = vmatpush1.bf16.msra.mxu0 %v3002_v43  ;;  %1624 = vmatpush1.bf16.msra.mxu1 %v2414_v40  ;;  %v2418_v43 = vld [vmem:[#allocation5 + $0xa8] ss:$16 sps:$4 sm:$0xff]   ;;  %v2253_v40 = vld [vmem:[%s3459_s4] sm:$0xff]  }
 0x5fb   :  { %1584 = vmatprep.subr.bf16.mxu0 %v3054_v49  ;;  %1625 = vmatprep.subr.bf16.mxu1 %v2415_v51  ;;  %v2419_v49 = vld [vmem:[#allocation5 + $0x8c] ss:$16 sps:$4 sm:$0xff]   ;;  %v1687_v51 = vpack.c.bf16 %v3048_v24, %v2998_v41  ;;  %v3499_v41 = vld [vmem:[#allocation18_spill] sm:$0xff] }
 0x5fc   :  { %1614 = vmatprep.mubr.bf16.mxu0 %v3482_v7  ;;  %1655 = vmatprep.mubr.bf16.mxu1 %v3482_v7  ;;  %v2421_v7 = vld [vmem:[#allocation5 + $0x6c] ss:$16 sps:$4 sm:$0xff]  }
 0x5fe   :  { %1585 = vmatpush1.bf16.msra.mxu0 %v3060_v34  ;;  %1626 = vmatpush1.bf16.msra.mxu1 %v2416_v22  ;;  %v2422_v34 = vld [vmem:[#allocation5 + $0x68] ss:$16 sps:$4 sm:$0xff]   ;;  %v1688_v22 = vpack.c.bf16 %v3168_v38, %v3106_v60 }
 0x5ff   :  { %1586 = vmatprep.subr.bf16.mxu0 %v3064_v47  ;;  %1627 = vmatprep.subr.bf16.mxu1 %v2417_v32  ;;  %v2423_v47 = vld [vmem:[#allocation5 + $0x4c] ss:$16 sps:$4 sm:$0xff]  }
 0x602   :  { %1587 = vmatpush1.bf16.msra.mxu0 %v3068_v44  ;;  %1628 = vmatpush1.bf16.msra.mxu1 %v2418_v43  ;;  %v2424_v44 = vld [vmem:[#allocation5 + $0x48] ss:$16 sps:$4 sm:$0xff]  }
 0x603   :  { %1588 = vmatprep.subr.bf16.mxu0 %v3072_v55  ;;  %1629 = vmatprep.subr.bf16.mxu1 %v2419_v49  ;;  %v2425_v55 = vld [vmem:[#allocation5 + $0x2c] ss:$16 sps:$4 sm:$0xff]   ;;  %v540_v49 = vadd.f32 %v2940_v58, %v2840_v42 }
 0x606   :  { %1589 = vmatpush1.bf16.msra.mxu0 %v3076_v62  ;;  %1630 = vmatpush1.bf16.msra.mxu1 %v2420_v54  ;;  %v2426_v62 = vld [vmem:[#allocation5 + $0x28] ss:$16 sps:$4 sm:$0xff]  }
 0x607   :  { %1590 = vmatprep.subr.bf16.mxu0 %v3126_v18  ;;  %1631 = vmatprep.subr.bf16.mxu1 %v2421_v7  ;;  %v2428_v18 = vld [vmem:[#allocation5 + $0x8] ss:$16 sps:$4 sm:$0xff]  }
 0x608   :  { %v3498_v54 = vld [vmem:[#allocation25_spill] sm:$0xff] }
 0x60a   :  { %1591 = vmatpush1.bf16.msra.mxu0 %v3130_v19  ;;  %1632 = vmatpush1.bf16.msra.mxu1 %v2422_v34  ;;  %v2246_v19 = vld [vmem:[%s3459_s4 + $0x38] sm:$0xff]  }
 0x60b   :  { %1592 = vmatprep.subr.bf16.mxu0 %v3134_v20  ;;  %1633 = vmatprep.subr.bf16.mxu1 %v2423_v47 }
 0x60e   :  { %1593 = vmatpush1.bf16.msra.mxu0 %v3138_v21  ;;  %1634 = vmatpush1.bf16.msra.mxu1 %v2424_v44 }
 0x60f   :  { %1594 = vmatprep.subr.bf16.mxu0 %v3142_v23  ;;  %1635 = vmatprep.subr.bf16.mxu1 %v2425_v55  ;;  %v3494_v23 = vld [vmem:[#allocation23_spill] sm:$0xff] }
 0x612   :  { %1595 = vmatpush1.bf16.msra.mxu0 %v3146_v25  ;;  %1636 = vmatpush1.bf16.msra.mxu1 %v2426_v62 }
 0x613   :  { %1596 = vmatprep.subr.bf16.mxu0 %v3150_v26  ;;  %1637 = vmatprep.subr.bf16.mxu1 %v2427_v61 }
 0x616   :  { %1597 = vmatpush1.bf16.msra.mxu0 %v3154_v5  ;;  %1638 = vmatpush1.bf16.msra.mxu1 %v2428_v18  ;;  %v3496_v5 = vld [vmem:[#allocation14_spill] sm:$0xff] }
 0x617   :  { %2167 = vmatprep.subr.bf16.mxu0 %v2246_v19 }
 0x6b9   :  { %v1511_v20 = vpop.f32.mrf.mxu0  ;;  %v1552_v21 = vpop.f32.mrf.mxu1 }
 0x6ba   :  { %v1559_v27 = vadd.f32 %v1511_v20, %v3494_v23  ;;  %v1561_v4 = vadd.f32 %v1552_v21, %v3496_v5 }
 0x6bb   :  { %v1513_v25 = vpop.f32.mrf.mxu0  ;;  %v1554_v28 = vpop.f32.mrf.mxu1 }
 0x6bc   :  { %v1563_v29 = vmul.f32 0.5, %v1559_v27  ;;  %v1560_v26 = vadd.f32 %v1513_v25, %v3495_v30  ;;  %v1562_v9 = vadd.f32 %v1554_v28, %v3497_v12 }
 0x6bd   :  { %v1515_v31 = vpop.f32.mrf.mxu0  ;;  %v1556_v11 = vpop.f32.mrf.mxu1 }
 0x6be   :  { %2314 = vtanh.f32 %v1563_v29  ;;  %v1567_v8 = vmul.f32 0.5, %v1560_v26  ;;  %v1572_v2 = vmul.f32 0.5, %v1562_v9  ;;  %v3240_v11 = vld [vmem:[%s3460_s5] ss:$0 sm:$0xff]  ;;  %s2471_s5 = smov 112  }
 0x6bf   :  { %v1516_v10 = vpop.f32.mrf.mxu0  ;;  %v1557_v33 = vpop.f32.mrf.mxu1 }
 0x6c0   :  { %2316 = vtanh.f32 %v1567_v8 }
 0x6c1   :  { %2318 = vtanh.f32 %v1561_v4 }
 0x6c2   :  { %2320 = vtanh.f32 %v1572_v2 }
 0x6cb   :  { %v2315_v13 = vpop.eup %2314 }
 0x6cc   :  { %v1565_v35 = vmul.f32 0.5, %v2315_v13 }
 0x6cd   :  { %v2317_v50 = vpop.eup %2316 }
 0x6ce   :  { %v1566_v15 = vadd.f32 0.5, %v1565_v35  ;;  %v1569_v17 = vmul.f32 0.5, %v2317_v50  ;;  %v2319_v37 = vpop.eup %2318 }
 0x6cf   :  { %v2321_v1 = vpop.eup %2320 }
 0x6d0   :  { %v1570_v14 = vadd.f32 0.5, %v1569_v17  ;;  %v1577_v56 = vmul.f32 %v2319_v37, %v1566_v15  ;;  %v1574_v45 = vmul.f32 0.5, %v2321_v1 }
 0x6d2   :  { %v1576_v6 = vmul.f32 %v1570_v14, %v3165_v52  ;;  %v1575_v36 = vadd.f32 0.5, %v1574_v45  ;;  %v1686_v52 = vpack.c.bf16 %v2952_v48, %v2902_v63  ;;  %v2250_v63 = vld [vmem:[%s3459_s4 + $0x18] sm:$0xff]   ;;  %v2251_v48 = vld [vmem:[%s3459_s4 + $0x10] sm:$0xff]  }
 0x6d4   :  { %v3197_v59 = vadd.f32 %v1577_v56, %v1576_v6 }
 0x6d6   :  { %2322 = vtanh.f32 %v3197_v59 }
 0x6e3   :  { %v2323_v3 = vpop.eup %2322 }
 0x6e4   :  { %v3200_v39 = vmul.f32 %v2323_v3, %v1575_v36 }
 0x6e6   :  { %v1581_v53 = vpack.c.bf16 %v3200_v39, %v3200_v39 }
 0x6e8   :  { %1615 = vmatmul.mubr.bf16.vlgmr.msra.gmra.mxu0 %v1581_v53  ;;  %1656 = vmatmul.mubr.bf16.vlgmr.msra.gmra.mxu1 %v1581_v53 }
 0x6e9   :  { %2168 = vmatpush3.bf16.msra.mxu0 %v2246_v19  ;;  %2183 = vmatprep.mubr.bf16.mxu0 %v1686_v52  ;;  %v3500_v19 = vld [vmem:[#allocation20_spill] sm:$0xff] }
 0x6ea   :  { %2169 = vmatprep.subr.bf16.mxu0 %v2247_v0 }
 0x6ed   :  { %2170 = vmatpush3.bf16.msra.mxu0 %v2247_v0 }
 0x6ee   :  { %2171 = vmatprep.subr.bf16.mxu0 %v2248_v16 }
 0x6f1   :  { %2172 = vmatpush3.bf16.msra.mxu0 %v2248_v16 }
 0x6f2   :  { %2173 = vmatprep.subr.bf16.mxu0 %v2249_v46 }
 0x6f5   :  { %2174 = vmatpush3.bf16.msra.mxu0 %v2249_v46 }
 0x6f6   :  { %2175 = vmatprep.subr.bf16.mxu0 %v2250_v63 }
 0x6f9   :  { %2176 = vmatpush3.bf16.msra.mxu0 %v2250_v63 }
 0x6fa   :  { %2177 = vmatprep.subr.bf16.mxu0 %v2251_v48 }
 0x6fd   :  { %2178 = vmatpush3.bf16.msra.mxu0 %v2251_v48 }
 0x6fe   :  { %2179 = vmatprep.subr.bf16.mxu0 %v2252_v57 }
 0x701   :  { %2180 = vmatpush3.bf16.msra.mxu0 %v2252_v57 }
 0x702   :  { %2181 = vmatprep.subr.bf16.mxu0 %v2253_v40 }
 0x705   :  { %2182 = vmatpush3.bf16.msra.mxu0 %v2253_v40 }
 0x708   :  { %2184 = vmatmul.mubr.bf16.vlgmr.msra.gmra.mxu0 %v1687_v51 }
 0x709   :  { %2187 = vmatprep.mubr.bf16.mxu0 %v1688_v22 }
 0x7a8   :  { %v1616_v32 = vpop.f32.mrf.mxu0  ;;  %v1657_v43 = vpop.f32.mrf.mxu1 }
 0x7a9   :  { %v1664_v7 = vadd.f32 %v1616_v32, %v3498_v54  ;;  %v1666_v24 = vadd.f32 %v1657_v43, %v3499_v41 }
 0x7aa   :  { %v1618_v34 = vpop.f32.mrf.mxu0  ;;  %v1659_v47 = vpop.f32.mrf.mxu1 }
 0x7ab   :  { %v1668_v44 = vmul.f32 0.5, %v1664_v7  ;;  %v1665_v55 = vadd.f32 %v1618_v34, %v540_v49  ;;  %v1667_v20 = vadd.f32 %v1659_v47, %v3500_v19 }
 0x7ac   :  { %v1620_v62 = vpop.f32.mrf.mxu0  ;;  %v1661_v61 = vpop.f32.mrf.mxu1 }
 0x7ad   :  { %2324 = vtanh.f32 %v1668_v44  ;;  %v1672_v18 = vmul.f32 0.5, %v1665_v55  ;;  %v1677_v21 = vmul.f32 0.5, %v1667_v20 }
 0x7ae   :  { %v1621_v60 = vpop.f32.mrf.mxu0  ;;  %v1662_v38 = vpop.f32.mrf.mxu1 }
 0x7af   :  { %2326 = vtanh.f32 %v1672_v18 }
 0x7b0   :  { %2328 = vtanh.f32 %v1666_v24 }
 0x7b1   :  { %2330 = vtanh.f32 %v1677_v21 }
 0x7ba   :  { %v2325_v42 = vpop.eup %2324 }
 0x7bb   :  { %v1670_v58 = vmul.f32 0.5, %v2325_v42 }
 0x7bc   :  { %v2327_v23 = vpop.eup %2326 }
 0x7bd   :  { %v1671_v27 = vadd.f32 0.5, %v1670_v58  ;;  %v1674_v25 = vmul.f32 0.5, %v2327_v23  ;;  %v2329_v28 = vpop.eup %2328 }
 0x7be   :  { %v2331_v8 = vpop.eup %2330 }
 0x7bf   :  { %v1675_v29 = vadd.f32 0.5, %v1674_v25  ;;  %v1682_v30 = vmul.f32 %v2329_v28, %v1671_v27  ;;  %v1679_v13 = vmul.f32 0.5, %v2331_v8 }
 0x7c1   :  { %v1681_v26 = vmul.f32 %v1675_v29, %v3197_v59  ;;  %v1680_v37 = vadd.f32 0.5, %v1679_v13 }
 0x7c3   :  { %v1683_v31 = vadd.f32 %v1682_v30, %v1681_v26 }
 0x7c5   :  { %2332 = vtanh.f32 %v1683_v31 }
 0x7c8   :  { %v2185_v5 = vpop.f32.mrf.mxu0 }
 0x7c9   :  { %v3243_v4 = vadd.f32 %v2185_v5, %v3240_v11 }
 0x7ca   :  { %v1795_v10 = vpop.f32.mrf.mxu0 }
 0x7cb   :  { %v3246_v33 = vadd.f32 %v3240_v11, %v1795_v10  ;;  %v1929_v12 = vsel %vm1922_vm10, %v3243_v4, -inf  ;;  %v1832_v9 = vsel %vm404_vm3, %v3243_v4, -inf }
 0x7cc   :  { %1930 = vmax.xlane.f32.xlu1 %v1929_v12  ;;  %1833 = vmax.xlane.f32.xlu0 %v1832_v9  ;;  %v2186_v2 = vpop.f32.mrf.mxu0 }
 0x7cd   :  { %v3253_v35 = vadd.f32 %v2186_v2, %v3240_v11  ;;  %v1923_v15 = vsel %vm1922_vm10, %v3246_v33, -inf  ;;  %v1826_v59 = vsel %vm404_vm3, %v3246_v33, -inf }
 0x7ce   :  { %v1798_v17 = vpop.f32.mrf.mxu0 }
 0x7cf   :  { %v1932_v50 = vsel %vm1922_vm10, %v3253_v35, -inf  ;;  %v3260_v56 = vadd.f32 %v3240_v11, %v1798_v17  ;;  %v1835_v6 = vsel %vm404_vm3, %v3253_v35, -inf }
 0x7d0   :  { %1933 = vmax.xlane.f32.xlu1 %v1932_v50  ;;  %1924 = vmax.xlane.f32.xlu0 %v1923_v15 }
 0x7d1   :  { %v1829_v36 = vsel %vm404_vm3, %v3260_v56, -inf  ;;  %v1926_v3 = vsel %vm1922_vm10, %v3260_v56, -inf }
 0x7d2   :  { %v2333_v14 = vpop.eup %2332 }
 0x7d3   :  { %v1685_v1 = vmul.f32 %v2333_v14, %v1680_v37 }
 0x7d4   :  { %1836 = vmax.xlane.f32.xlu1 %v1835_v6  ;;  %1827 = vmax.xlane.f32.xlu0 %v1826_v59 }
 0x7d5   :  { %v1689_v45 = vpack.c.bf16 %v1685_v1, %v3200_v39 }
 0x7d7   :  { %2188 = vmatmul.mubr.bf16.gmra.mxu0 %v1689_v45 }
 0x7d8   :  { %1830 = vmax.xlane.f32.xlu1 %v1829_v36  ;;  %1927 = vmax.xlane.f32.xlu0 %v1926_v3 }
 0x855   :  { %v3271_v53 = vpop.xlane.xlu0 %1833  ;;  %v1931_v16 = vpop.xlane.xlu1 %1930 }
 0x856   :  { %v3279_v39 = vsub.f32 %v3243_v4, %v1931_v16  ;;  %v3353_v45 = vsub.f32 %v3243_v4, %v3271_v53 }
 0x858   :  { %v1959_v57 = vmul.f32 1.442695, %v3279_v39 }
 0x859   :  { %v1925_v0 = vpop.xlane.xlu0 %1924  ;;  %v1934_v55 = vpop.xlane.xlu1 %1933 }
 0x85a   :  { %v3301_v61 = vsub.f32 %v3253_v35, %v1934_v55  ;;  %v3311_v60 = vsub.f32 %v3246_v33, %v1925_v0  ;;  %v1862_v0 = vmul.f32 1.442695, %v3353_v45 }
 0x85c   :  { %v1961_v38 = vmul.f32 1.442695, %v3301_v61  ;;  %v1955_v20 = vmul.f32 1.442695, %v3311_v60 }
 0x85d   :  { %v3273_v52 = vpop.xlane.xlu0 %1827  ;;  %v1837_v27 = vpop.xlane.xlu1 %1836 }
 0x85e   :  { %v3349_v1 = vsub.f32 %v3246_v33, %v3273_v52  ;;  %v3357_v3 = vsub.f32 %v3253_v35, %v1837_v27 }
 0x860   :  { %v1858_v36 = vmul.f32 1.442695, %v3349_v1 }
 0x861   :  { %v1928_v46 = vpop.xlane.xlu0 %1927  ;;  %v1831_v25 = vpop.xlane.xlu1 %1830 }
 0x862   :  { %v3276_v63 = vsub.f32 %v3260_v56, %v1928_v46  ;;  %v3361_v16 = vsub.f32 %v3260_v56, %v1831_v25  ;;  %v1864_v46 = vmul.f32 1.442695, %v3357_v3 }
 0x864   :  { %v1957_v48 = vmul.f32 1.442695, %v3276_v63  ;;  %v1860_v33 = vmul.f32 1.442695, %v3361_v16 }
 0x866   :  { %2334 = vpow2.f32 %v1957_v48 }
 0x867   :  { %2336 = vpow2.f32 %v1959_v57 }
 0x868   :  { %2338 = vpow2.f32 %v1961_v38 }
 0x869   :  { %2340 = vpow2.f32 %v1955_v20 }
 0x873   :  { %v2335_v40 = vpop.eup %2334 }
 0x874   :  { %1981 = vrot.lane.b32.xlu1 %v2335_v40, %s2471_s5  ;;  %v2337_v51 = vpop.eup %2336 }
 0x875   :  { %v2339_v21 = vpop.eup %2338 }
 0x876   :  { %v2341_v42 = vpop.eup %2340 }
 0x878   :  { %1983 = vrot.lane.b32.xlu1 %v2337_v51, %s2471_s5 }
 0x897   :  { %v2189_v22 = vpop.f32.mrf.mxu0 }
 0x898   :  { %v3286_v32 = vadd.f32 %v2189_v22, %v3240_v11 }
 0x899   :  { %v1811_v43 = vpop.f32.mrf.mxu0 }
 0x89a   :  { %v1941_v49 = vsel %vm1922_vm10, %v3286_v32, -inf  ;;  %v3294_v34 = vadd.f32 %v3240_v11, %v1811_v43  ;;  %v1844_v47 = vsel %vm404_vm3, %v3286_v32, -inf }
 0x89b   :  { %v2190_v54 = vpop.f32.mrf.mxu0  ;;  %1942 = vmax.xlane.f32.xlu0 %v1941_v49 }
 0x89c   :  { %v3291_v7 = vadd.f32 %v2190_v54, %v3240_v11  ;;  %v1935_v24 = vsel %vm1922_vm10, %v3294_v34, -inf  ;;  %v1838_v58 = vsel %vm404_vm3, %v3294_v34, -inf }
 0x89d   :  { %v1814_v62 = vpop.f32.mrf.mxu0 }
 0x89e   :  { %v1944_v44 = vsel %vm1922_vm10, %v3291_v7, -inf  ;;  %v3304_v41 = vadd.f32 %v3240_v11, %v1814_v62  ;;  %v1847_v18 = vsel %vm404_vm3, %v3291_v7, -inf }
 0x89f   :  { %1845 = vmax.xlane.f32.xlu0 %v1844_v47  ;;  %1945 = vmax.xlane.f32.xlu1 %v1944_v44 }
 0x8a0   :  { %v1938_v19 = vsel %vm1922_vm10, %v3304_v41, -inf  ;;  %v1841_v23 = vsel %vm404_vm3, %v3304_v41, -inf }
 0x8a3   :  { %1936 = vmax.xlane.f32.xlu0 %v1935_v24  ;;  %1848 = vmax.xlane.f32.xlu1 %v1847_v18 }
 0x8a7   :  { %1939 = vmax.xlane.f32.xlu1 %v1938_v19 }
 0x8b8   :  { %1985 = vrot.lane.b32.xlu1 %v2339_v21, %s2471_s5 }
 0x8b9   :  { %1979 = vrot.lane.b32.xlu0 %v2341_v42, %s2471_s5 }
 0x8d8   :  { %1839 = vmax.xlane.f32.xlu0 %v1838_v58 }
 0x8dc   :  { %1842 = vmax.xlane.f32.xlu1 %v1841_v23 }
 0x8e6   :  { %v3323_v28 = vpop.permute.xlu1 %1981 }
 0x8ea   :  { %v3325_v29 = vpop.permute.xlu1 %1983 }
 0x8eb   :  { %v2010_v25 = vsel %vm2003_vm11, %v3325_v29, 0.0 }
 0x924   :  { %v1943_v30 = vpop.xlane.xlu0 %1942 }
 0x925   :  { %v3331_v10 = vsub.f32 %v3286_v32, %v1943_v30 }
 0x927   :  { %v1967_v50 = vmul.f32 1.442695, %v3331_v10 }
 0x928   :  { %v1946_v26 = vpop.xlane.xlu1 %1945  ;;  %v1846_v31 = vpop.xlane.xlu0 %1845 }
 0x929   :  { %v3335_v2 = vsub.f32 %v3291_v7, %v1946_v26  ;;  %v3370_v48 = vsub.f32 %v3286_v32, %v1846_v31 }
 0x92b   :  { %v1969_v17 = vmul.f32 1.442695, %v3335_v2  ;;  %v1870_v43 = vmul.f32 1.442695, %v3370_v48 }
 0x92c   :  { %v1849_v11 = vpop.xlane.xlu1 %1848  ;;  %v1937_v5 = vpop.xlane.xlu0 %1936 }
 0x92d   :  { %v3328_v8 = vsub.f32 %v3294_v34, %v1937_v5  ;;  %v3366_v52 = vsub.f32 %v3291_v7, %v1849_v11 }
 0x92f   :  { %v1963_v12 = vmul.f32 1.442695, %v3328_v8  ;;  %v1872_v4 = vmul.f32 1.442695, %v3366_v52 }
 0x930   :  { %v1940_v9 = vpop.xlane.xlu1 %1939  ;;  %v1980_v35 = vpop.permute.xlu0 %1979 }
 0x931   :  { %v3338_v13 = vsub.f32 %v3304_v41, %v1940_v9  ;;  %2342 = vpow2.f32 %v1963_v12  ;;  %v2004_v27 = vsel %vm2003_vm11, %v1980_v35, 0.0 }
 0x933   :  { %v1965_v15 = vmul.f32 1.442695, %v3338_v13 }
 0x934   :  { %v1986_v56 = vpop.permute.xlu1 %1985 }
 0x935   :  { %2344 = vpow2.f32 %v1965_v15  ;;  %v2013_v21 = vsel %vm2003_vm11, %v1986_v56, 0.0 }
 0x936   :  { %2346 = vpow2.f32 %v1967_v50 }
 0x937   :  { %2348 = vpow2.f32 %v1969_v17 }
 0x938   :  { %2350 = vpow2.f32 %v1858_v36 }
 0x939   :  { %2352 = vpow2.f32 %v1862_v0 }
 0x93a   :  { %2354 = vpow2.f32 %v1864_v46 }
 0x93b   :  { %2356 = vpow2.f32 %v1860_v33 }
 0x93c   :  { %2358 = vpow2.f32 %v1872_v4 }
 0x93e   :  { %v2343_v37 = vpop.eup %2342 }
 0x93f   :  { %1987 = vrot.lane.b32.xlu0 %v2343_v37, %s2471_s5 }
 0x942   :  { %v2345_v14 = vpop.eup %2344 }
 0x943   :  { %v2347_v6 = vpop.eup %2346  ;;  %1989 = vrot.lane.b32.xlu1 %v2345_v14, %s2471_s5 }
 0x944   :  { %1991 = vrot.lane.b32.xlu0 %v2347_v6, %s2471_s5  ;;  %v2349_v59 = vpop.eup %2348 }
 0x945   :  { %v2351_v53 = vpop.eup %2350 }
 0x946   :  { %v1874_v51 = vsel %vm404_vm3, %v2351_v53, 0.0  ;;  %v2353_v22 = vpop.eup %2352 }
 0x947   :  { %1993 = vrot.lane.b32.xlu1 %v2349_v59, %s2471_s5  ;;  %v2355_v7 = vpop.eup %2354  ;;  %v1880_v32 = vsel %vm404_vm3, %v2353_v22, 0.0 }
 0x948   :  { %v2357_v44 = vpop.eup %2356  ;;  %v1883_v55 = vsel %vm404_vm3, %v2355_v7, 0.0 }
 0x949   :  { %v1877_v62 = vsel %vm404_vm3, %v2357_v44, 0.0  ;;  %v2359_v24 = vpop.eup %2358 }
 0x94a   :  { %v1895_v18 = vsel %vm404_vm3, %v2359_v24, 0.0 }
 0x961   :  { %v1840_v57 = vpop.xlane.xlu0 %1839 }
 0x962   :  { %v3373_v40 = vsub.f32 %v3294_v34, %v1840_v57 }
 0x963   :  { %1875 = vadd.xlane.f32.xlu0 %v1874_v51 }
 0x964   :  { %v1866_v49 = vmul.f32 1.442695, %v3373_v40 }
 0x965   :  { %v1843_v54 = vpop.xlane.xlu1 %1842 }
 0x966   :  { %2360 = vpow2.f32 %v1866_v49  ;;  %v3379_v47 = vsub.f32 %v3304_v41, %v1843_v54  ;;  %v2007_v41 = vsel %vm2003_vm11, %v3323_v28, 0.0 }
 0x967   :  { %1881 = vadd.xlane.f32.xlu0 %v1880_v32  ;;  %2362 = vpow2.f32 %v1870_v43 }
 0x968   :  { %v1868_v34 = vmul.f32 1.442695, %v3379_v47 }
 0x96a   :  { %2364 = vpow2.f32 %v1868_v34 }
 0x96b   :  { %1884 = vadd.xlane.f32.xlu0 %v1883_v55  ;;  %1878 = vadd.xlane.f32.xlu1 %v1877_v62 }
 0x96f   :  { %1896 = vadd.xlane.f32.xlu1 %v1895_v18 }
 0x973   :  { %v2361_v38 = vpop.eup %2360  ;;  %2008 = vadd.xlane.f32.xlu1 %v2007_v41 }
 0x974   :  { %v1886_v19 = vsel %vm404_vm3, %v2361_v38, 0.0  ;;  %v2363_v20 = vpop.eup %2362 }
 0x975   :  { %1887 = vadd.xlane.f32.xlu0 %v1886_v19  ;;  %v1892_v58 = vsel %vm404_vm3, %v2363_v20, 0.0 }
 0x977   :  { %v2365_v42 = vpop.eup %2364  ;;  %2014 = vadd.xlane.f32.xlu1 %v2013_v21 }
 0x978   :  { %v1889_v23 = vsel %vm404_vm3, %v2365_v42, 0.0 }
 0x979   :  { %1893 = vadd.xlane.f32.xlu0 %v1892_v58 }
 0x97b   :  { %1890 = vadd.xlane.f32.xlu1 %v1889_v23 }
 0x97d   :  { %2005 = vadd.xlane.f32.xlu0 %v2004_v27 }
 0x981   :  { %2011 = vadd.xlane.f32.xlu0 %v2010_v25 }
 0x9b1   :  { %v1988_v28 = vpop.permute.xlu0 %1987 }
 0x9b2   :  { %v2016_v30 = vsel %vm2003_vm11, %v1988_v28, 0.0 }
 0x9b3   :  { %2017 = vadd.xlane.f32.xlu0 %v2016_v30 }
 0x9b5   :  { %v1990_v26 = vpop.permute.xlu1 %1989 }
 0x9b6   :  { %v1992_v31 = vpop.permute.xlu0 %1991  ;;  %v2019_v11 = vsel %vm2003_vm11, %v1990_v26, 0.0 }
 0x9b7   :  { %2020 = vadd.xlane.f32.xlu1 %v2019_v11  ;;  %v2022_v5 = vsel %vm2003_vm11, %v1992_v31, 0.0 }
 0x9b8   :  { %2023 = vadd.xlane.f32.xlu0 %v2022_v5 }
 0x9b9   :  { %v1994_v12 = vpop.permute.xlu1 %1993 }
 0x9ba   :  { %v2025_v9 = vsel %vm2003_vm11, %v1994_v12, 0.0 }
 0x9bb   :  { %2026 = vadd.xlane.f32.xlu1 %v2025_v9 }
 0x9ec   :  { %v1876_v50 = vpop.xlane.xlu0 %1875 }
 0x9f0   :  { %v1882_v15 = vpop.xlane.xlu0 %1881 }
 0x9f4   :  { %v1879_v29 = vpop.xlane.xlu1 %1878  ;;  %v1885_v37 = vpop.xlane.xlu0 %1884 }
 0x9f5   :  { %2366 = vlog2.f32 %v1879_v29 }
 0x9f6   :  { %2368 = vlog2.f32 %v1885_v37 }
 0x9f8   :  { %v1897_v17 = vpop.xlane.xlu1 %1896 }
 0x9fc   :  { %v2009_v14 = vpop.xlane.xlu1 %2008 }
 0x9fd   :  { %2370 = vlog2.f32 %v2009_v14 }
 0x9fe   :  { %v1888_v6 = vpop.xlane.xlu0 %1887 }
 0xa00   :  { %v2015_v59 = vpop.xlane.xlu1 %2014 }
 0xa01   :  { %2372 = vlog2.f32 %v2015_v59 }
 0xa02   :  { %v1894_v36 = vpop.xlane.xlu0 %1893  ;;  %2374 = vlog2.f32 %v1876_v50  ;;  %v2367_v0 = vpop.eup %2366 }
 0xa03   :  { %2376 = vlog2.f32 %v1882_v15  ;;  %v2369_v33 = vpop.eup %2368  ;;  %v1901_v4 = vmul.f32 0.6931472, %v2367_v0 }
 0xa04   :  { %v1905_v57 = vmul.f32 0.6931472, %v2369_v33 }
 0xa05   :  { %v1915_v51 = vsub.f32 %v3361_v16, %v1901_v4 }
 0xa06   :  { %v2006_v46 = vpop.xlane.xlu0 %2005  ;;  %v1917_v32 = vsub.f32 %v3357_v3, %v1905_v57 }
 0xa07   :  { %2378 = vlog2.f32 %v2006_v46 }
 0xa0a   :  { %v2371_v35 = vpop.eup %2370  ;;  %v2012_v53 = vpop.xlane.xlu0 %2011 }
 0xa0b   :  { %v2031_v56 = vmul.f32 0.6931472, %v2371_v35  ;;  %2380 = vlog2.f32 %v2012_v53 }
 0xa0c   :  { %2382 = vlog2.f32 %v1888_v6 }
 0xa0d   :  { %v2045_v22 = vsub.f32 %v3276_v63, %v2031_v56  ;;  %2384 = vlog2.f32 %v1894_v36 }
 0xa0e   :  { %v2373_v43 = vpop.eup %2372 }
 0xa0f   :  { %v2053_v49 = vsel %vm404_vm3, %v1915_v51, %v2045_v22  ;;  %v2035_v54 = vmul.f32 0.6931472, %v2373_v43  ;;  %v2375_v7 = vpop.eup %2374 }
 0xa10   :  { %2062 = vst.msk [vmem:[%s3461_s6 + $0x8] sm:$0xff] %vm2060_vm12, %v2053_v49  ;;  %v2377_v34 = vpop.eup %2376  ;;  %v1899_v55 = vmul.f32 0.6931472, %v2375_v7 }
 0xa11   :  { %v2047_v44 = vsub.f32 %v3301_v61, %v2035_v54  ;;  %v1903_v18 = vmul.f32 0.6931472, %v2377_v34 }
 0xa12   :  { %v1914_v24 = vsub.f32 %v3349_v1, %v1899_v55 }
 0xa13   :  { %v2055_v16 = vsel %vm404_vm3, %v1917_v32, %v2047_v44  ;;  %v1916_v19 = vsub.f32 %v3353_v45, %v1903_v18 }
 0xa14   :  { %v2379_v62 = vpop.eup %2378  ;;  %2064 = vst.msk [vmem:[%s3461_s6 + $0x18] sm:$0xff] %vm2060_vm12, %v2055_v16 }
 0xa15   :  { %v2029_v63 = vmul.f32 0.6931472, %v2379_v62 }
 0xa17   :  { %v2044_v41 = vsub.f32 %v3311_v60, %v2029_v63  ;;  %v1891_v60 = vpop.xlane.xlu1 %1890 }
 0xa18   :  { %v2381_v38 = vpop.eup %2380  ;;  %2386 = vlog2.f32 %v1891_v60 }
 0xa19   :  { %v2052_v3 = vsel %vm404_vm3, %v1914_v24, %v2044_v41  ;;  %v2033_v61 = vmul.f32 0.6931472, %v2381_v38 }
 0xa1a   :  { %2061 = vst.msk [vmem:[%s3461_s6] sm:$0xff] %vm2060_vm12, %v2052_v3 }
 0xa1b   :  { %v2046_v20 = vsub.f32 %v3279_v39, %v2033_v61  ;;  %v2383_v39 = vpop.eup %2382 }
 0xa1c   :  { %v2385_v23 = vpop.eup %2384  ;;  %v1907_v25 = vmul.f32 0.6931472, %v2383_v39 }
 0xa1d   :  { %v2054_v21 = vsel %vm404_vm3, %v1916_v19, %v2046_v20  ;;  %v1911_v12 = vmul.f32 0.6931472, %v2385_v23 }
 0xa1e   :  { %2063 = vst.msk [vmem:[%s3461_s6 + $0x10] sm:$0xff] %vm2060_vm12, %v2054_v21  ;;  %v1918_v5 = vsub.f32 %v3373_v40, %v1907_v25 }
 0xa1f   :  { %v1920_v40 = vsub.f32 %v3370_v48, %v1911_v12 }
 0xa25   :  { %v2387_v27 = vpop.eup %2386 }
 0xa26   :  { %v1909_v31 = vmul.f32 0.6931472, %v2387_v27 }
 0xa28   :  { %v1919_v14 = vsub.f32 %v3379_v47, %v1909_v31 }
 0xa3c   :  { %v2018_v1 = vpop.xlane.xlu0 %2017 }
 0xa3d   :  { %2388 = vlog2.f32 %v2018_v1 }
 0xa3e   :  { %2390 = vlog2.f32 %v1897_v17 }
 0xa40   :  { %v2021_v42 = vpop.xlane.xlu1 %2020 }
 0xa41   :  { %2392 = vlog2.f32 %v2021_v42  ;;  %v2024_v58 = vpop.xlane.xlu0 %2023 }
 0xa42   :  { %2394 = vlog2.f32 %v2024_v58 }
 0xa44   :  { %v2027_v45 = vpop.xlane.xlu1 %2026 }
 0xa45   :  { %2396 = vlog2.f32 %v2027_v45 }
 0xa4a   :  { %v2389_v28 = vpop.eup %2388 }
 0xa4b   :  { %v2037_v30 = vmul.f32 0.6931472, %v2389_v28  ;;  %v2391_v26 = vpop.eup %2390 }
 0xa4c   :  { %v1913_v37 = vmul.f32 0.6931472, %v2391_v26 }
 0xa4d   :  { %v2048_v9 = vsub.f32 %v3328_v8, %v2037_v30 }
 0xa4e   :  { %v2393_v11 = vpop.eup %2392  ;;  %v1921_v46 = vsub.f32 %v3366_v52, %v1913_v37 }
 0xa4f   :  { %v2395_v50 = vpop.eup %2394  ;;  %v2039_v15 = vmul.f32 0.6931472, %v2393_v11  ;;  %v2056_v29 = vsel %vm404_vm3, %v1918_v5, %v2048_v9 }
 0xa50   :  { %v2041_v17 = vmul.f32 0.6931472, %v2395_v50  ;;  %2065 = vst.msk [vmem:[%s3461_s6 + $0x20] sm:$0xff] %vm2060_vm12, %v2056_v29 }
 0xa51   :  { %v2049_v6 = vsub.f32 %v3338_v13, %v2039_v15 }
 0xa52   :  { %v2397_v59 = vpop.eup %2396  ;;  %v2050_v8 = vsub.f32 %v3331_v10, %v2041_v17 }
 0xa53   :  { %v2057_v36 = vsel %vm404_vm3, %v1919_v14, %v2049_v6  ;;  %v2043_v0 = vmul.f32 0.6931472, %v2397_v59 }
 0xa54   :  { %2066 = vst.msk [vmem:[%s3461_s6 + $0x28] sm:$0xff] %vm2060_vm12, %v2057_v36  ;;  %v2058_v47 = vsel %vm404_vm3, %v1920_v40, %v2050_v8 }
 0xa55   :  { %2067 = vst.msk [vmem:[%s3461_s6 + $0x30] sm:$0xff] %vm2060_vm12, %v2058_v47  ;;  %v2051_v13 = vsub.f32 %v3335_v2, %v2043_v0 }
 0xa57   :  { %v2059_v10 = vsel %vm404_vm3, %v1921_v46, %v2051_v13 }
 0xa58   :  { %2068 = vst.msk [vmem:[%s3461_s6 + $0x38] sm:$0xff] %vm2060_vm12, %v2059_v10 }
 0xa59   :  { %2073 = vsyncpa [#allocation3], 1 }
 0xa5a   :  { %2074 = vsyncpa [#allocation4], 1 }

</bundles_post_ra>
